<compile_context>
chip_gen: v5e
topology: v5e:2x2
jax: 0.10.0
libtpu: 0.0.40
codegen_flags: <defaults>
</compile_context>

<pallas_src>
import jax
import jax.numpy as jnp
from jax.experimental import pallas as pl
from jax.experimental.pallas import tpu as pltpu


def a3tgcn_kernel(probs_ref, a_ref, x_ref, gates_ref, lwh_ref, head_ref, o_ref):
    f32 = jnp.float32
    bf16 = jnp.bfloat16
    TM = a_ref.shape[0]            # node-row tile
    P = x_ref.shape[1]             # periods
    H = lwh_ref.shape[0]           # hidden channels
    H2 = 2 * H

    # Neighborhood aggregation for this node-row tile, all periods at once.
    # bf16 MXU operands, f32 accumulation.
    ax = jnp.dot(a_ref[...], x_ref[...], preferred_element_type=f32)    # [TM, P] f32

    gates = gates_ref[...]                 # [5, 128] f32 (hoisted x-side rows + head bias)
    wx_zr = gates[0:1, :H2]                # [1, 2H]  x-side weights (z|r)
    bx_zr = gates[1:2, :H2]                # [1, 2H]  x-side biases  (z|r)
    wx_h = gates[2:3, :H]                  # [1, H]   x-side weight  (h~)
    bx_h = gates[3:4, :H]                  # [1, H]   x-side bias    (h~)
    b_out = gates[4:5, :]                  # [1, 128] head bias (exact f32, lanes >= O are 0)

    lwh_zr = lwh_ref[:, :H2]               # [H, 2H]  fused z/r hidden weight (bf16)
    lwh_h = lwh_ref[:, H2:H2 + H]          # [H, H]   candidate hidden weight (bf16)
    w_out = head_ref[...]                  # [H, 128] head weight (bf16, lane padded)

    h = jnp.zeros((TM, H), f32)            # TGCN hidden state (per-node, tile-local)
    h_acc = jnp.zeros((TM, H), f32)        # attention-weighted accumulation

    # Small static period count -> unrolled.  x-side fma's are recomputed inside the
    # loop (no preactivation lists pinning vregs across the unrolled recurrence).
    # TODO(synk): for P >= 32 switch to lax.fori_loop(unroll=...) to bound code size.
    for t in range(P):
        s = ax[:, t:t + 1]                 # [TM, 1] aggregated signal for period t
        zr = jax.nn.sigmoid(
            s * wx_zr + bx_zr
            + jnp.dot(h.astype(bf16), lwh_zr, preferred_element_type=f32))   # [TM, 2H]
        z = zr[:, :H]
        r = zr[:, H:]
        h_tilde = jnp.tanh(
            s * wx_h + bx_h
            + jnp.dot((h * r).astype(bf16), lwh_h, preferred_element_type=f32))  # [TM, H]
        h = z * h + (1.0 - z) * h_tilde
        h_acc = h_acc + probs_ref[t] * h   # attention weight (SMEM scalar)

    # head: relu -> Linear(hidden, out), output lanes padded to 128 for a dense vst.
    h_relu = jnp.maximum(h_acc, 0.0)
    o_ref[...] = (jnp.dot(h_relu.astype(bf16), w_out, preferred_element_type=f32)
                  + b_out).astype(o_ref.dtype)


def recurrent_a3tgcn(x, a_hat, params, *, row_tile=None):
    f32 = jnp.float32
    bf16 = jnp.bfloat16
    N, P = x.shape
    H = params["conv_w"].shape[1]
    O = params["w_out"].shape[1]
    O_PAD = 128                                             # lane-dense output width
    H2 = 2 * H
    assert 3 * H <= 128 and O <= O_PAD, "packing layout assumes 3*H <= 128"

    # Node-row tile: recurrence is node-local once A_hat @ X is formed, so rows tile
    # cleanly.  Prefer large multiples of 16 (bf16 sublane packing); fall back to N.
    if row_tile is None:
        row_tile = next((tm for tm in (1024, 512, 256, 128, 64, 32, 16)
                         if N % tm == 0), N)
    TM = row_tile
    assert N % TM == 0, "row_tile must divide N"
    grid = (N // TM,)

    probs = jax.nn.softmax(params["attention"]).astype(f32)  # softmax over periods (glue)

    cw, cb = params["conv_w"], params["conv_b"]              # [3, H] (GCNConv with in=1)
    lwx, lwh, lb = params["lin_w_x"], params["lin_w_h"], params["lin_b"]

    # Rank-1 hoist of the x-side gate matmuls (exact):
    #   (s*cw[g] + cb[g]) @ lwx[g] == s * (cw[g] @ lwx[g]) + (cb[g] @ lwx[g])
    wx = jnp.stack([cw[g] @ lwx[g] for g in range(3)])            # [3, H]
    bx = jnp.stack([cb[g] @ lwx[g] + lb[g] for g in range(3)])    # [3, H]

    # Hoisted gate rows + exact-f32 head bias packed into one lane-dense f32 array.
    gates = jnp.zeros((5, 128), f32)
    gates = gates.at[0, :H2].set(jnp.concatenate([wx[0], wx[1]]))  # wx_zr
    gates = gates.at[1, :H2].set(jnp.concatenate([bx[0], bx[1]]))  # bx_zr
    gates = gates.at[2, :H].set(wx[2])                             # wx_h
    gates = gates.at[3, :H].set(bx[2])                             # bx_h
    gates = gates.at[4, :O].set(params["b_out"][0])                # head bias (f32)

    # Hidden-state weights packed lane-dense and cast to bf16 (MXU-native operands).
    lwh_pack = jnp.zeros((H, 128), bf16)
    lwh_pack = lwh_pack.at[:, :H2].set(
        jnp.concatenate([lwh[0], lwh[1]], axis=1).astype(bf16))    # fused z/r [H,2H]
    lwh_pack = lwh_pack.at[:, H2:H2 + H].set(lwh[2].astype(bf16))  # candidate [H,H]

    # Head weight, zero-padded to 128 output lanes (slice back to O outside).
    head = jnp.zeros((H, O_PAD), bf16).at[:, :O].set(params["w_out"].astype(bf16))

    a_bf = a_hat.astype(bf16)
    x_bf = x.astype(bf16)

    flops = (2 * N * N * P                                   # A_hat @ X
             + P * (2 * N * H * H2 + 2 * N * H * H)          # per-step hidden matmuls
             + 2 * N * H * O_PAD)                            # head
    transcendentals = P * N * 3 * H                          # sigmoid(2H) + tanh(H) / node / step
    bytes_accessed = (2 * (N * N + N * P)                    # bf16 a_hat + x
                      + 4 * gates.size + 2 * (lwh_pack.size + head.size)
                      + 4 * P + 4 * N * O_PAD)

    grid_spec = pltpu.PrefetchScalarGridSpec(
        num_scalar_prefetch=1,                               # attention probs -> SMEM
        grid=grid,
        in_specs=[
            pl.BlockSpec((TM, N), lambda i, p: (i, 0)),      # a_hat row tile (bf16 stream)
            pl.BlockSpec((N, P), lambda i, p: (0, 0)),       # full x resident (needed whole)
            pl.BlockSpec((5, 128), lambda i, p: (0, 0)),     # gate rows + head bias (f32)
            pl.BlockSpec((H, 128), lambda i, p: (0, 0)),     # packed hidden weights (bf16)
            pl.BlockSpec((H, O_PAD), lambda i, p: (0, 0)),   # head weight (bf16)
        ],
        out_specs=pl.BlockSpec((TM, O_PAD), lambda i, p: (i, 0)),
    )

    out = pl.pallas_call(
        a3tgcn_kernel,
        out_shape=jax.ShapeDtypeStruct((N, O_PAD), f32),
        grid_spec=grid_spec,
        compiler_params=pltpu.CompilerParams(
            dimension_semantics=("parallel",)),              # row tiles independent (feeds v7x 2 TCs)
        cost_estimate=pl.CostEstimate(flops=flops,
                                      transcendentals=transcendentals,
                                      bytes_accessed=bytes_accessed),
    )(probs, a_bf, x_bf, gates, lwh_pack, head)

    return out[:, :O]


def build_normalized_adjacency(edge_index, edge_weight, num_nodes):
    """GCN normalization with self loops: A_hat = D^-1/2 (A + I) D^-1/2 (dense)."""
    # TODO(synk): sparse scatter-based aggregation has no clean Pallas equivalent at
    # this scale; densified normalized adjacency is built in plain JAX glue.  For truly
    # sparse graphs at large N, keep it sparse and skip zero tiles via scalar prefetch.
    src, dst = edge_index[0], edge_index[1]
    loops = jnp.arange(num_nodes, dtype=src.dtype)
    src = jnp.concatenate([src, loops])
    dst = jnp.concatenate([dst, loops])
    ew = jnp.concatenate([edge_weight, jnp.ones((num_nodes,), edge_weight.dtype)])
    deg = jnp.zeros((num_nodes,), jnp.float32).at[dst].add(ew)
    dinv = jnp.where(deg > 0, 1.0 / jnp.sqrt(deg), 0.0)
    norm = dinv[src] * ew * dinv[dst]
    a_hat = jnp.zeros((num_nodes, num_nodes), jnp.float32).at[dst, src].add(norm)
    return a_hat


def reference_forward(x, a_hat, params):
    """Pure-JAX f32 reference of the same math, for validation."""
    N, P = x.shape
    H = params["conv_w"].shape[1]
    probs = jax.nn.softmax(params["attention"])
    ax = a_hat @ x
    h = jnp.zeros((N, H), jnp.float32)
    h_acc = jnp.zeros((N, H), jnp.float32)
    for t in range(P):
        s = ax[:, t:t + 1]
        cz = s * params["conv_w"][0:1] + params["conv_b"][0:1]
        cr = s * params["conv_w"][1:2] + params["conv_b"][1:2]
        ch = s * params["conv_w"][2:3] + params["conv_b"][2:3]
        z = jax.nn.sigmoid(cz @ params["lin_w_x"][0] + h @ params["lin_w_h"][0]
                           + params["lin_b"][0:1])
        r = jax.nn.sigmoid(cr @ params["lin_w_x"][1] + h @ params["lin_w_h"][1]
                           + params["lin_b"][1:2])
        ht = jnp.tanh(ch @ params["lin_w_x"][2] + (h * r) @ params["lin_w_h"][2]
                      + params["lin_b"][2:3])
        h = z * h + (1.0 - z) * ht
        h_acc = h_acc + probs[t] * h
    return jnp.maximum(h_acc, 0.0) @ params["w_out"] + params["b_out"]


if __name__ == "__main__":
    N = 32           # num_nodes
    P = 8            # periods  (= x.shape[1], in_channels = 1 after x.view(N, 1, P))
    H = 32           # hidden_channels
    O = 4            # out_channels

    key = jax.random.PRNGKey(0)
    ks = jax.random.split(key, 12)

    # Deterministic synthetic parameters (shapes implied by A3TGCN(in=1, hidden=H, periods=P))
    params = {
        "conv_w":   jax.random.normal(ks[0], (3, H), jnp.float32) * 0.5,        # GCNConv W, in=1
        "conv_b":   jax.random.normal(ks[1], (3, H), jnp.float32) * 0.1,        # GCNConv bias
        "lin_w_x":  jax.random.normal(ks[2], (3, H, H), jnp.float32) / jnp.sqrt(2.0 * H),
        "lin_w_h":  jax.random.normal(ks[3], (3, H, H), jnp.float32) / jnp.sqrt(2.0 * H),
        "lin_b":    jax.random.normal(ks[4], (3, H), jnp.float32) * 0.1,
        "attention": jax.random.uniform(ks[5], (P,), jnp.float32),              # uniform_ init
        "w_out":    jax.random.normal(ks[6], (H, O), jnp.float32) / jnp.sqrt(1.0 * H),
        "b_out":    jax.random.normal(ks[7], (1, O), jnp.float32) * 0.1,
    }

    # Inputs: node signal over P periods and a small bidirectional ring graph
    x = jax.random.normal(ks[8], (N, P), jnp.float32)
    src = jnp.arange(N, dtype=jnp.int32)
    dst = (src + 1) % N
    edge_index = jnp.stack([jnp.concatenate([src, dst]),
                            jnp.concatenate([dst, src])])            # [2, 2N]
    edge_weight = jax.random.uniform(ks[9], (2 * N,), jnp.float32,
                                     minval=0.5, maxval=1.5)

    a_hat = build_normalized_adjacency(edge_index, edge_weight, N)

    # row_tile=16 -> a 2-step node-row grid at this toy size (exercises the tiling path).
    out = recurrent_a3tgcn(x, a_hat, params, row_tile=16)
    out = jax.block_until_ready(out)

    ref = reference_forward(x, a_hat, params)
    assert out.shape == (N, O)
    # Tolerance absorbs bf16 MXU-operand rounding (accumulation stays f32).
    assert jnp.allclose(out, ref, rtol=1e-2, atol=1e-2), "kernel mismatch vs reference"

    print("KERNEL_OK")
</pallas_src>

<mosaic_0001>
module attributes {stable_mosaic.version = 11 : i64} {
  func.func @a3tgcn_kernel(%arg0: i32, %arg1: memref<8xf32, #tpu.memory_space<smem>>, %arg2: memref<16x32xbf16, #tpu.memory_space<vmem>>, %arg3: memref<32x8xbf16, #tpu.memory_space<vmem>>, %arg4: memref<5x128xf32, #tpu.memory_space<vmem>>, %arg5: memref<32x128xbf16, #tpu.memory_space<vmem>>, %arg6: memref<32x128xbf16, #tpu.memory_space<vmem>>, %arg7: memref<16x128xf32, #tpu.memory_space<vmem>>) attributes {dimension_semantics = [#tpu.dimension_semantics<parallel>], iteration_bounds = array<i64: 2>, scalar_prefetch = 1 : i64, scratch_operands = 0 : i64, tpu.core_type = #tpu.core_type<tc>, window_params = [{transform_indices = @transform_0, window_bounds = array<i64: 16, 32>}, {pipeline_mode = #tpu.pipeline_mode<synchronous>, transform_indices = @transform_1, window_bounds = array<i64: 32, 8>}, {pipeline_mode = #tpu.pipeline_mode<synchronous>, transform_indices = @transform_2, window_bounds = array<i64: 5, 128>}, {pipeline_mode = #tpu.pipeline_mode<synchronous>, transform_indices = @transform_3, window_bounds = array<i64: 32, 128>}, {pipeline_mode = #tpu.pipeline_mode<synchronous>, transform_indices = @transform_4, window_bounds = array<i64: 32, 128>}, {transform_indices = @transform_5, window_bounds = array<i64: 16, 128>}]} {
    %c0 = arith.constant 0 : index
    %c0_0 = arith.constant 0 : index
    %0 = vector.load %arg2[%c0, %c0_0] : memref<16x32xbf16, #tpu.memory_space<vmem>>, vector<16x32xbf16>
    %c0_1 = arith.constant 0 : index
    %c0_2 = arith.constant 0 : index
    %1 = vector.load %arg3[%c0_1, %c0_2] : memref<32x8xbf16, #tpu.memory_space<vmem>>, vector<32x8xbf16>
    %cst = arith.constant dense<0.000000e+00> : vector<16x8xf32>
    %2 = tpu.matmul %0, %1, %cst {dimension_numbers = #tpu.dot_dimension_numbers<[1], [0], [0], [1], [0, 0, 1, 1], [], []>} : vector<16x32xbf16>, vector<32x8xbf16>, vector<16x8xf32> -> vector<16x8xf32>
    %c0_3 = arith.constant 0 : index
    %c0_4 = arith.constant 0 : index
    %3 = vector.load %arg4[%c0_3, %c0_4] : memref<5x128xf32, #tpu.memory_space<vmem>>, vector<5x128xf32>
    %4 = vector.extract_strided_slice %3 {offsets = [0, 0], sizes = [1, 64], strides = [1, 1]} : vector<5x128xf32> to vector<1x64xf32>
    %5 = vector.extract_strided_slice %3 {offsets = [1, 0], sizes = [1, 64], strides = [1, 1]} : vector<5x128xf32> to vector<1x64xf32>
    %6 = vector.extract_strided_slice %3 {offsets = [2, 0], sizes = [1, 32], strides = [1, 1]} : vector<5x128xf32> to vector<1x32xf32>
    %7 = vector.extract_strided_slice %3 {offsets = [3, 0], sizes = [1, 32], strides = [1, 1]} : vector<5x128xf32> to vector<1x32xf32>
    %8 = vector.extract_strided_slice %3 {offsets = [4, 0], sizes = [1, 128], strides = [1, 1]} : vector<5x128xf32> to vector<1x128xf32>
    %c0_5 = arith.constant 0 : index
    %c0_6 = arith.constant 0 : index
    %9 = vector.load %arg5[%c0_5, %c0_6] : memref<32x128xbf16, #tpu.memory_space<vmem>>, vector<32x64xbf16>
    %c0_7 = arith.constant 0 : index
    %c64 = arith.constant 64 : index
    %10 = vector.load %arg5[%c0_7, %c64] : memref<32x128xbf16, #tpu.memory_space<vmem>>, vector<32x32xbf16>
    %c0_8 = arith.constant 0 : index
    %c0_9 = arith.constant 0 : index
    %11 = vector.load %arg6[%c0_8, %c0_9] : memref<32x128xbf16, #tpu.memory_space<vmem>>, vector<32x128xbf16>
    %cst_10 = arith.constant 0.000000e+00 : f32
    %12 = vector.broadcast %cst_10 : f32 to vector<16x32xf32>
    %cst_11 = arith.constant 0.000000e+00 : f32
    %13 = vector.broadcast %cst_11 : f32 to vector<16x32xf32>
    %14 = vector.extract_strided_slice %2 {offsets = [0, 0], sizes = [16, 1], strides = [1, 1]} : vector<16x8xf32> to vector<16x1xf32>
    %15 = vector.broadcast %14 : vector<16x1xf32> to vector<16x64xf32>
    %16 = vector.broadcast %4 : vector<1x64xf32> to vector<16x64xf32>
    %17 = arith.mulf %15, %16 : vector<16x64xf32>
    %18 = vector.broadcast %5 : vector<1x64xf32> to vector<16x64xf32>
    %19 = arith.addf %17, %18 : vector<16x64xf32>
    %20 = arith.truncf %12 : vector<16x32xf32> to vector<16x32xbf16>
    %cst_12 = arith.constant dense<0.000000e+00> : vector<16x64xf32>
    %21 = tpu.matmul %20, %9, %cst_12 {dimension_numbers = #tpu.dot_dimension_numbers<[1], [0], [0], [1], [0, 0, 1, 1], [], []>} : vector<16x32xbf16>, vector<32x64xbf16>, vector<16x64xf32> -> vector<16x64xf32>
    %22 = arith.addf %19, %21 : vector<16x64xf32>
    %23 = arith.negf %22 : vector<16x64xf32>
    %24 = math.exp %23 : vector<16x64xf32>
    %cst_13 = arith.constant 1.000000e+00 : f32
    %25 = vector.broadcast %cst_13 : f32 to vector<16x64xf32>
    %26 = arith.addf %25, %24 : vector<16x64xf32>
    %27 = arith.divf %25, %26 : vector<16x64xf32>
    %28 = vector.extract_strided_slice %27 {offsets = [0, 0], sizes = [16, 32], strides = [1, 1]} : vector<16x64xf32> to vector<16x32xf32>
    %29 = vector.extract_strided_slice %27 {offsets = [0, 32], sizes = [16, 32], strides = [1, 1]} : vector<16x64xf32> to vector<16x32xf32>
    %30 = vector.broadcast %14 : vector<16x1xf32> to vector<16x32xf32>
    %31 = vector.broadcast %6 : vector<1x32xf32> to vector<16x32xf32>
    %32 = arith.mulf %30, %31 : vector<16x32xf32>
    %33 = vector.broadcast %7 : vector<1x32xf32> to vector<16x32xf32>
    %34 = arith.addf %32, %33 : vector<16x32xf32>
    %35 = arith.mulf %12, %29 : vector<16x32xf32>
    %36 = arith.truncf %35 : vector<16x32xf32> to vector<16x32xbf16>
    %cst_14 = arith.constant dense<0.000000e+00> : vector<16x32xf32>
    %37 = tpu.matmul %36, %10, %cst_14 {dimension_numbers = #tpu.dot_dimension_numbers<[1], [0], [0], [1], [0, 0, 1, 1], [], []>} : vector<16x32xbf16>, vector<32x32xbf16>, vector<16x32xf32> -> vector<16x32xf32>
    %38 = arith.addf %34, %37 : vector<16x32xf32>
    %39 = math.tanh %38 : vector<16x32xf32>
    %40 = arith.mulf %28, %12 : vector<16x32xf32>
    %cst_15 = arith.constant 1.000000e+00 : f32
    %41 = vector.broadcast %cst_15 : f32 to vector<16x32xf32>
    %42 = arith.subf %41, %28 : vector<16x32xf32>
    %43 = arith.mulf %42, %39 : vector<16x32xf32>
    %44 = arith.addf %40, %43 : vector<16x32xf32>
    %c0_16 = arith.constant 0 : index
    %45 = memref.load %arg1[%c0_16] : memref<8xf32, #tpu.memory_space<smem>>
    %46 = vector.broadcast %45 : f32 to vector<16x32xf32>
    %47 = arith.mulf %46, %44 : vector<16x32xf32>
    %48 = arith.addf %13, %47 : vector<16x32xf32>
    %49 = vector.extract_strided_slice %2 {offsets = [0, 1], sizes = [16, 1], strides = [1, 1]} : vector<16x8xf32> to vector<16x1xf32>
    %50 = vector.broadcast %49 : vector<16x1xf32> to vector<16x64xf32>
    %51 = vector.broadcast %4 : vector<1x64xf32> to vector<16x64xf32>
    %52 = arith.mulf %50, %51 : vector<16x64xf32>
    %53 = vector.broadcast %5 : vector<1x64xf32> to vector<16x64xf32>
    %54 = arith.addf %52, %53 : vector<16x64xf32>
    %55 = arith.truncf %44 : vector<16x32xf32> to vector<16x32xbf16>
    %cst_17 = arith.constant dense<0.000000e+00> : vector<16x64xf32>
    %56 = tpu.matmul %55, %9, %cst_17 {dimension_numbers = #tpu.dot_dimension_numbers<[1], [0], [0], [1], [0, 0, 1, 1], [], []>} : vector<16x32xbf16>, vector<32x64xbf16>, vector<16x64xf32> -> vector<16x64xf32>
    %57 = arith.addf %54, %56 : vector<16x64xf32>
    %58 = arith.negf %57 : vector<16x64xf32>
    %59 = math.exp %58 : vector<16x64xf32>
    %cst_18 = arith.constant 1.000000e+00 : f32
    %60 = vector.broadcast %cst_18 : f32 to vector<16x64xf32>
    %61 = arith.addf %60, %59 : vector<16x64xf32>
    %62 = arith.divf %60, %61 : vector<16x64xf32>
    %63 = vector.extract_strided_slice %62 {offsets = [0, 0], sizes = [16, 32], strides = [1, 1]} : vector<16x64xf32> to vector<16x32xf32>
    %64 = vector.extract_strided_slice %62 {offsets = [0, 32], sizes = [16, 32], strides = [1, 1]} : vector<16x64xf32> to vector<16x32xf32>
    %65 = vector.broadcast %49 : vector<16x1xf32> to vector<16x32xf32>
    %66 = vector.broadcast %6 : vector<1x32xf32> to vector<16x32xf32>
    %67 = arith.mulf %65, %66 : vector<16x32xf32>
    %68 = vector.broadcast %7 : vector<1x32xf32> to vector<16x32xf32>
    %69 = arith.addf %67, %68 : vector<16x32xf32>
    %70 = arith.mulf %44, %64 : vector<16x32xf32>
    %71 = arith.truncf %70 : vector<16x32xf32> to vector<16x32xbf16>
    %cst_19 = arith.constant dense<0.000000e+00> : vector<16x32xf32>
    %72 = tpu.matmul %71, %10, %cst_19 {dimension_numbers = #tpu.dot_dimension_numbers<[1], [0], [0], [1], [0, 0, 1, 1], [], []>} : vector<16x32xbf16>, vector<32x32xbf16>, vector<16x32xf32> -> vector<16x32xf32>
    %73 = arith.addf %69, %72 : vector<16x32xf32>
    %74 = math.tanh %73 : vector<16x32xf32>
    %75 = arith.mulf %63, %44 : vector<16x32xf32>
    %cst_20 = arith.constant 1.000000e+00 : f32
    %76 = vector.broadcast %cst_20 : f32 to vector<16x32xf32>
    %77 = arith.subf %76, %63 : vector<16x32xf32>
    %78 = arith.mulf %77, %74 : vector<16x32xf32>
    %79 = arith.addf %75, %78 : vector<16x32xf32>
    %c1 = arith.constant 1 : index
    %80 = memref.load %arg1[%c1] : memref<8xf32, #tpu.memory_space<smem>>
    %81 = vector.broadcast %80 : f32 to vector<16x32xf32>
    %82 = arith.mulf %81, %79 : vector<16x32xf32>
    %83 = arith.addf %48, %82 : vector<16x32xf32>
    %84 = vector.extract_strided_slice %2 {offsets = [0, 2], sizes = [16, 1], strides = [1, 1]} : vector<16x8xf32> to vector<16x1xf32>
    %85 = vector.broadcast %84 : vector<16x1xf32> to vector<16x64xf32>
    %86 = vector.broadcast %4 : vector<1x64xf32> to vector<16x64xf32>
    %87 = arith.mulf %85, %86 : vector<16x64xf32>
    %88 = vector.broadcast %5 : vector<1x64xf32> to vector<16x64xf32>
    %89 = arith.addf %87, %88 : vector<16x64xf32>
    %90 = arith.truncf %79 : vector<16x32xf32> to vector<16x32xbf16>
    %cst_21 = arith.constant dense<0.000000e+00> : vector<16x64xf32>
    %91 = tpu.matmul %90, %9, %cst_21 {dimension_numbers = #tpu.dot_dimension_numbers<[1], [0], [0], [1], [0, 0, 1, 1], [], []>} : vector<16x32xbf16>, vector<32x64xbf16>, vector<16x64xf32> -> vector<16x64xf32>
    %92 = arith.addf %89, %91 : vector<16x64xf32>
    %93 = arith.negf %92 : vector<16x64xf32>
    %94 = math.exp %93 : vector<16x64xf32>
    %cst_22 = arith.constant 1.000000e+00 : f32
    %95 = vector.broadcast %cst_22 : f32 to vector<16x64xf32>
    %96 = arith.addf %95, %94 : vector<16x64xf32>
    %97 = arith.divf %95, %96 : vector<16x64xf32>
    %98 = vector.extract_strided_slice %97 {offsets = [0, 0], sizes = [16, 32], strides = [1, 1]} : vector<16x64xf32> to vector<16x32xf32>
    %99 = vector.extract_strided_slice %97 {offsets = [0, 32], sizes = [16, 32], strides = [1, 1]} : vector<16x64xf32> to vector<16x32xf32>
    %100 = vector.broadcast %84 : vector<16x1xf32> to vector<16x32xf32>
    %101 = vector.broadcast %6 : vector<1x32xf32> to vector<16x32xf32>
    %102 = arith.mulf %100, %101 : vector<16x32xf32>
    %103 = vector.broadcast %7 : vector<1x32xf32> to vector<16x32xf32>
    %104 = arith.addf %102, %103 : vector<16x32xf32>
    %105 = arith.mulf %79, %99 : vector<16x32xf32>
    %106 = arith.truncf %105 : vector<16x32xf32> to vector<16x32xbf16>
    %cst_23 = arith.constant dense<0.000000e+00> : vector<16x32xf32>
    %107 = tpu.matmul %106, %10, %cst_23 {dimension_numbers = #tpu.dot_dimension_numbers<[1], [0], [0], [1], [0, 0, 1, 1], [], []>} : vector<16x32xbf16>, vector<32x32xbf16>, vector<16x32xf32> -> vector<16x32xf32>
    %108 = arith.addf %104, %107 : vector<16x32xf32>
    %109 = math.tanh %108 : vector<16x32xf32>
    %110 = arith.mulf %98, %79 : vector<16x32xf32>
    %cst_24 = arith.constant 1.000000e+00 : f32
    %111 = vector.broadcast %cst_24 : f32 to vector<16x32xf32>
    %112 = arith.subf %111, %98 : vector<16x32xf32>
    %113 = arith.mulf %112, %109 : vector<16x32xf32>
    %114 = arith.addf %110, %113 : vector<16x32xf32>
    %c2 = arith.constant 2 : index
    %115 = memref.load %arg1[%c2] : memref<8xf32, #tpu.memory_space<smem>>
    %116 = vector.broadcast %115 : f32 to vector<16x32xf32>
    %117 = arith.mulf %116, %114 : vector<16x32xf32>
    %118 = arith.addf %83, %117 : vector<16x32xf32>
    %119 = vector.extract_strided_slice %2 {offsets = [0, 3], sizes = [16, 1], strides = [1, 1]} : vector<16x8xf32> to vector<16x1xf32>
    %120 = vector.broadcast %119 : vector<16x1xf32> to vector<16x64xf32>
    %121 = vector.broadcast %4 : vector<1x64xf32> to vector<16x64xf32>
    %122 = arith.mulf %120, %121 : vector<16x64xf32>
    %123 = vector.broadcast %5 : vector<1x64xf32> to vector<16x64xf32>
    %124 = arith.addf %122, %123 : vector<16x64xf32>
    %125 = arith.truncf %114 : vector<16x32xf32> to vector<16x32xbf16>
    %cst_25 = arith.constant dense<0.000000e+00> : vector<16x64xf32>
    %126 = tpu.matmul %125, %9, %cst_25 {dimension_numbers = #tpu.dot_dimension_numbers<[1], [0], [0], [1], [0, 0, 1, 1], [], []>} : vector<16x32xbf16>, vector<32x64xbf16>, vector<16x64xf32> -> vector<16x64xf32>
    %127 = arith.addf %124, %126 : vector<16x64xf32>
    %128 = arith.negf %127 : vector<16x64xf32>
    %129 = math.exp %128 : vector<16x64xf32>
    %cst_26 = arith.constant 1.000000e+00 : f32
    %130 = vector.broadcast %cst_26 : f32 to vector<16x64xf32>
    %131 = arith.addf %130, %129 : vector<16x64xf32>
    %132 = arith.divf %130, %131 : vector<16x64xf32>
    %133 = vector.extract_strided_slice %132 {offsets = [0, 0], sizes = [16, 32], strides = [1, 1]} : vector<16x64xf32> to vector<16x32xf32>
    %134 = vector.extract_strided_slice %132 {offsets = [0, 32], sizes = [16, 32], strides = [1, 1]} : vector<16x64xf32> to vector<16x32xf32>
    %135 = vector.broadcast %119 : vector<16x1xf32> to vector<16x32xf32>
    %136 = vector.broadcast %6 : vector<1x32xf32> to vector<16x32xf32>
    %137 = arith.mulf %135, %136 : vector<16x32xf32>
    %138 = vector.broadcast %7 : vector<1x32xf32> to vector<16x32xf32>
    %139 = arith.addf %137, %138 : vector<16x32xf32>
    %140 = arith.mulf %114, %134 : vector<16x32xf32>
    %141 = arith.truncf %140 : vector<16x32xf32> to vector<16x32xbf16>
    %cst_27 = arith.constant dense<0.000000e+00> : vector<16x32xf32>
    %142 = tpu.matmul %141, %10, %cst_27 {dimension_numbers = #tpu.dot_dimension_numbers<[1], [0], [0], [1], [0, 0, 1, 1], [], []>} : vector<16x32xbf16>, vector<32x32xbf16>, vector<16x32xf32> -> vector<16x32xf32>
    %143 = arith.addf %139, %142 : vector<16x32xf32>
    %144 = math.tanh %143 : vector<16x32xf32>
    %145 = arith.mulf %133, %114 : vector<16x32xf32>
    %cst_28 = arith.constant 1.000000e+00 : f32
    %146 = vector.broadcast %cst_28 : f32 to vector<16x32xf32>
    %147 = arith.subf %146, %133 : vector<16x32xf32>
    %148 = arith.mulf %147, %144 : vector<16x32xf32>
    %149 = arith.addf %145, %148 : vector<16x32xf32>
    %c3 = arith.constant 3 : index
    %150 = memref.load %arg1[%c3] : memref<8xf32, #tpu.memory_space<smem>>
    %151 = vector.broadcast %150 : f32 to vector<16x32xf32>
    %152 = arith.mulf %151, %149 : vector<16x32xf32>
    %153 = arith.addf %118, %152 : vector<16x32xf32>
    %154 = vector.extract_strided_slice %2 {offsets = [0, 4], sizes = [16, 1], strides = [1, 1]} : vector<16x8xf32> to vector<16x1xf32>
    %155 = vector.broadcast %154 : vector<16x1xf32> to vector<16x64xf32>
    %156 = vector.broadcast %4 : vector<1x64xf32> to vector<16x64xf32>
    %157 = arith.mulf %155, %156 : vector<16x64xf32>
    %158 = vector.broadcast %5 : vector<1x64xf32> to vector<16x64xf32>
    %159 = arith.addf %157, %158 : vector<16x64xf32>
    %160 = arith.truncf %149 : vector<16x32xf32> to vector<16x32xbf16>
    %cst_29 = arith.constant dense<0.000000e+00> : vector<16x64xf32>
    %161 = tpu.matmul %160, %9, %cst_29 {dimension_numbers = #tpu.dot_dimension_numbers<[1], [0], [0], [1], [0, 0, 1, 1], [], []>} : vector<16x32xbf16>, vector<32x64xbf16>, vector<16x64xf32> -> vector<16x64xf32>
    %162 = arith.addf %159, %161 : vector<16x64xf32>
    %163 = arith.negf %162 : vector<16x64xf32>
    %164 = math.exp %163 : vector<16x64xf32>
    %cst_30 = arith.constant 1.000000e+00 : f32
    %165 = vector.broadcast %cst_30 : f32 to vector<16x64xf32>
    %166 = arith.addf %165, %164 : vector<16x64xf32>
    %167 = arith.divf %165, %166 : vector<16x64xf32>
    %168 = vector.extract_strided_slice %167 {offsets = [0, 0], sizes = [16, 32], strides = [1, 1]} : vector<16x64xf32> to vector<16x32xf32>
    %169 = vector.extract_strided_slice %167 {offsets = [0, 32], sizes = [16, 32], strides = [1, 1]} : vector<16x64xf32> to vector<16x32xf32>
    %170 = vector.broadcast %154 : vector<16x1xf32> to vector<16x32xf32>
    %171 = vector.broadcast %6 : vector<1x32xf32> to vector<16x32xf32>
    %172 = arith.mulf %170, %171 : vector<16x32xf32>
    %173 = vector.broadcast %7 : vector<1x32xf32> to vector<16x32xf32>
    %174 = arith.addf %172, %173 : vector<16x32xf32>
    %175 = arith.mulf %149, %169 : vector<16x32xf32>
    %176 = arith.truncf %175 : vector<16x32xf32> to vector<16x32xbf16>
    %cst_31 = arith.constant dense<0.000000e+00> : vector<16x32xf32>
    %177 = tpu.matmul %176, %10, %cst_31 {dimension_numbers = #tpu.dot_dimension_numbers<[1], [0], [0], [1], [0, 0, 1, 1], [], []>} : vector<16x32xbf16>, vector<32x32xbf16>, vector<16x32xf32> -> vector<16x32xf32>
    %178 = arith.addf %174, %177 : vector<16x32xf32>
    %179 = math.tanh %178 : vector<16x32xf32>
    %180 = arith.mulf %168, %149 : vector<16x32xf32>
    %cst_32 = arith.constant 1.000000e+00 : f32
    %181 = vector.broadcast %cst_32 : f32 to vector<16x32xf32>
    %182 = arith.subf %181, %168 : vector<16x32xf32>
    %183 = arith.mulf %182, %179 : vector<16x32xf32>
    %184 = arith.addf %180, %183 : vector<16x32xf32>
    %c4 = arith.constant 4 : index
    %185 = memref.load %arg1[%c4] : memref<8xf32, #tpu.memory_space<smem>>
    %186 = vector.broadcast %185 : f32 to vector<16x32xf32>
    %187 = arith.mulf %186, %184 : vector<16x32xf32>
    %188 = arith.addf %153, %187 : vector<16x32xf32>
    %189 = vector.extract_strided_slice %2 {offsets = [0, 5], sizes = [16, 1], strides = [1, 1]} : vector<16x8xf32> to vector<16x1xf32>
    %190 = vector.broadcast %189 : vector<16x1xf32> to vector<16x64xf32>
    %191 = vector.broadcast %4 : vector<1x64xf32> to vector<16x64xf32>
    %192 = arith.mulf %190, %191 : vector<16x64xf32>
    %193 = vector.broadcast %5 : vector<1x64xf32> to vector<16x64xf32>
    %194 = arith.addf %192, %193 : vector<16x64xf32>
    %195 = arith.truncf %184 : vector<16x32xf32> to vector<16x32xbf16>
    %cst_33 = arith.constant dense<0.000000e+00> : vector<16x64xf32>
    %196 = tpu.matmul %195, %9, %cst_33 {dimension_numbers = #tpu.dot_dimension_numbers<[1], [0], [0], [1], [0, 0, 1, 1], [], []>} : vector<16x32xbf16>, vector<32x64xbf16>, vector<16x64xf32> -> vector<16x64xf32>
    %197 = arith.addf %194, %196 : vector<16x64xf32>
    %198 = arith.negf %197 : vector<16x64xf32>
    %199 = math.exp %198 : vector<16x64xf32>
    %cst_34 = arith.constant 1.000000e+00 : f32
    %200 = vector.broadcast %cst_34 : f32 to vector<16x64xf32>
    %201 = arith.addf %200, %199 : vector<16x64xf32>
    %202 = arith.divf %200, %201 : vector<16x64xf32>
    %203 = vector.extract_strided_slice %202 {offsets = [0, 0], sizes = [16, 32], strides = [1, 1]} : vector<16x64xf32> to vector<16x32xf32>
    %204 = vector.extract_strided_slice %202 {offsets = [0, 32], sizes = [16, 32], strides = [1, 1]} : vector<16x64xf32> to vector<16x32xf32>
    %205 = vector.broadcast %189 : vector<16x1xf32> to vector<16x32xf32>
    %206 = vector.broadcast %6 : vector<1x32xf32> to vector<16x32xf32>
    %207 = arith.mulf %205, %206 : vector<16x32xf32>
    %208 = vector.broadcast %7 : vector<1x32xf32> to vector<16x32xf32>
    %209 = arith.addf %207, %208 : vector<16x32xf32>
    %210 = arith.mulf %184, %204 : vector<16x32xf32>
    %211 = arith.truncf %210 : vector<16x32xf32> to vector<16x32xbf16>
    %cst_35 = arith.constant dense<0.000000e+00> : vector<16x32xf32>
    %212 = tpu.matmul %211, %10, %cst_35 {dimension_numbers = #tpu.dot_dimension_numbers<[1], [0], [0], [1], [0, 0, 1, 1], [], []>} : vector<16x32xbf16>, vector<32x32xbf16>, vector<16x32xf32> -> vector<16x32xf32>
    %213 = arith.addf %209, %212 : vector<16x32xf32>
    %214 = math.tanh %213 : vector<16x32xf32>
    %215 = arith.mulf %203, %184 : vector<16x32xf32>
    %cst_36 = arith.constant 1.000000e+00 : f32
    %216 = vector.broadcast %cst_36 : f32 to vector<16x32xf32>
    %217 = arith.subf %216, %203 : vector<16x32xf32>
    %218 = arith.mulf %217, %214 : vector<16x32xf32>
    %219 = arith.addf %215, %218 : vector<16x32xf32>
    %c5 = arith.constant 5 : index
    %220 = memref.load %arg1[%c5] : memref<8xf32, #tpu.memory_space<smem>>
    %221 = vector.broadcast %220 : f32 to vector<16x32xf32>
    %222 = arith.mulf %221, %219 : vector<16x32xf32>
    %223 = arith.addf %188, %222 : vector<16x32xf32>
    %224 = vector.extract_strided_slice %2 {offsets = [0, 6], sizes = [16, 1], strides = [1, 1]} : vector<16x8xf32> to vector<16x1xf32>
    %225 = vector.broadcast %224 : vector<16x1xf32> to vector<16x64xf32>
    %226 = vector.broadcast %4 : vector<1x64xf32> to vector<16x64xf32>
    %227 = arith.mulf %225, %226 : vector<16x64xf32>
    %228 = vector.broadcast %5 : vector<1x64xf32> to vector<16x64xf32>
    %229 = arith.addf %227, %228 : vector<16x64xf32>
    %230 = arith.truncf %219 : vector<16x32xf32> to vector<16x32xbf16>
    %cst_37 = arith.constant dense<0.000000e+00> : vector<16x64xf32>
    %231 = tpu.matmul %230, %9, %cst_37 {dimension_numbers = #tpu.dot_dimension_numbers<[1], [0], [0], [1], [0, 0, 1, 1], [], []>} : vector<16x32xbf16>, vector<32x64xbf16>, vector<16x64xf32> -> vector<16x64xf32>
    %232 = arith.addf %229, %231 : vector<16x64xf32>
    %233 = arith.negf %232 : vector<16x64xf32>
    %234 = math.exp %233 : vector<16x64xf32>
    %cst_38 = arith.constant 1.000000e+00 : f32
    %235 = vector.broadcast %cst_38 : f32 to vector<16x64xf32>
    %236 = arith.addf %235, %234 : vector<16x64xf32>
    %237 = arith.divf %235, %236 : vector<16x64xf32>
    %238 = vector.extract_strided_slice %237 {offsets = [0, 0], sizes = [16, 32], strides = [1, 1]} : vector<16x64xf32> to vector<16x32xf32>
    %239 = vector.extract_strided_slice %237 {offsets = [0, 32], sizes = [16, 32], strides = [1, 1]} : vector<16x64xf32> to vector<16x32xf32>
    %240 = vector.broadcast %224 : vector<16x1xf32> to vector<16x32xf32>
    %241 = vector.broadcast %6 : vector<1x32xf32> to vector<16x32xf32>
    %242 = arith.mulf %240, %241 : vector<16x32xf32>
    %243 = vector.broadcast %7 : vector<1x32xf32> to vector<16x32xf32>
    %244 = arith.addf %242, %243 : vector<16x32xf32>
    %245 = arith.mulf %219, %239 : vector<16x32xf32>
    %246 = arith.truncf %245 : vector<16x32xf32> to vector<16x32xbf16>
    %cst_39 = arith.constant dense<0.000000e+00> : vector<16x32xf32>
    %247 = tpu.matmul %246, %10, %cst_39 {dimension_numbers = #tpu.dot_dimension_numbers<[1], [0], [0], [1], [0, 0, 1, 1], [], []>} : vector<16x32xbf16>, vector<32x32xbf16>, vector<16x32xf32> -> vector<16x32xf32>
    %248 = arith.addf %244, %247 : vector<16x32xf32>
    %249 = math.tanh %248 : vector<16x32xf32>
    %250 = arith.mulf %238, %219 : vector<16x32xf32>
    %cst_40 = arith.constant 1.000000e+00 : f32
    %251 = vector.broadcast %cst_40 : f32 to vector<16x32xf32>
    %252 = arith.subf %251, %238 : vector<16x32xf32>
    %253 = arith.mulf %252, %249 : vector<16x32xf32>
    %254 = arith.addf %250, %253 : vector<16x32xf32>
    %c6 = arith.constant 6 : index
    %255 = memref.load %arg1[%c6] : memref<8xf32, #tpu.memory_space<smem>>
    %256 = vector.broadcast %255 : f32 to vector<16x32xf32>
    %257 = arith.mulf %256, %254 : vector<16x32xf32>
    %258 = arith.addf %223, %257 : vector<16x32xf32>
    %259 = vector.extract_strided_slice %2 {offsets = [0, 7], sizes = [16, 1], strides = [1, 1]} : vector<16x8xf32> to vector<16x1xf32>
    %260 = vector.broadcast %259 : vector<16x1xf32> to vector<16x64xf32>
    %261 = vector.broadcast %4 : vector<1x64xf32> to vector<16x64xf32>
    %262 = arith.mulf %260, %261 : vector<16x64xf32>
    %263 = vector.broadcast %5 : vector<1x64xf32> to vector<16x64xf32>
    %264 = arith.addf %262, %263 : vector<16x64xf32>
    %265 = arith.truncf %254 : vector<16x32xf32> to vector<16x32xbf16>
    %cst_41 = arith.constant dense<0.000000e+00> : vector<16x64xf32>
    %266 = tpu.matmul %265, %9, %cst_41 {dimension_numbers = #tpu.dot_dimension_numbers<[1], [0], [0], [1], [0, 0, 1, 1], [], []>} : vector<16x32xbf16>, vector<32x64xbf16>, vector<16x64xf32> -> vector<16x64xf32>
    %267 = arith.addf %264, %266 : vector<16x64xf32>
    %268 = arith.negf %267 : vector<16x64xf32>
    %269 = math.exp %268 : vector<16x64xf32>
    %cst_42 = arith.constant 1.000000e+00 : f32
    %270 = vector.broadcast %cst_42 : f32 to vector<16x64xf32>
    %271 = arith.addf %270, %269 : vector<16x64xf32>
    %272 = arith.divf %270, %271 : vector<16x64xf32>
    %273 = vector.extract_strided_slice %272 {offsets = [0, 0], sizes = [16, 32], strides = [1, 1]} : vector<16x64xf32> to vector<16x32xf32>
    %274 = vector.extract_strided_slice %272 {offsets = [0, 32], sizes = [16, 32], strides = [1, 1]} : vector<16x64xf32> to vector<16x32xf32>
    %275 = vector.broadcast %259 : vector<16x1xf32> to vector<16x32xf32>
    %276 = vector.broadcast %6 : vector<1x32xf32> to vector<16x32xf32>
    %277 = arith.mulf %275, %276 : vector<16x32xf32>
    %278 = vector.broadcast %7 : vector<1x32xf32> to vector<16x32xf32>
    %279 = arith.addf %277, %278 : vector<16x32xf32>
    %280 = arith.mulf %254, %274 : vector<16x32xf32>
    %281 = arith.truncf %280 : vector<16x32xf32> to vector<16x32xbf16>
    %cst_43 = arith.constant dense<0.000000e+00> : vector<16x32xf32>
    %282 = tpu.matmul %281, %10, %cst_43 {dimension_numbers = #tpu.dot_dimension_numbers<[1], [0], [0], [1], [0, 0, 1, 1], [], []>} : vector<16x32xbf16>, vector<32x32xbf16>, vector<16x32xf32> -> vector<16x32xf32>
    %283 = arith.addf %279, %282 : vector<16x32xf32>
    %284 = math.tanh %283 : vector<16x32xf32>
    %285 = arith.mulf %273, %254 : vector<16x32xf32>
    %cst_44 = arith.constant 1.000000e+00 : f32
    %286 = vector.broadcast %cst_44 : f32 to vector<16x32xf32>
    %287 = arith.subf %286, %273 : vector<16x32xf32>
    %288 = arith.mulf %287, %284 : vector<16x32xf32>
    %289 = arith.addf %285, %288 : vector<16x32xf32>
    %c7 = arith.constant 7 : index
    %290 = memref.load %arg1[%c7] : memref<8xf32, #tpu.memory_space<smem>>
    %291 = vector.broadcast %290 : f32 to vector<16x32xf32>
    %292 = arith.mulf %291, %289 : vector<16x32xf32>
    %293 = arith.addf %258, %292 : vector<16x32xf32>
    %cst_45 = arith.constant 0.000000e+00 : f32
    %294 = vector.broadcast %cst_45 : f32 to vector<16x32xf32>
    %295 = arith.maximumf %293, %294 : vector<16x32xf32>
    %296 = arith.truncf %295 : vector<16x32xf32> to vector<16x32xbf16>
    %cst_46 = arith.constant dense<0.000000e+00> : vector<16x128xf32>
    %297 = tpu.matmul %296, %11, %cst_46 {dimension_numbers = #tpu.dot_dimension_numbers<[1], [0], [0], [1], [0, 0, 1, 1], [], []>} : vector<16x32xbf16>, vector<32x128xbf16>, vector<16x128xf32> -> vector<16x128xf32>
    %298 = vector.broadcast %8 : vector<1x128xf32> to vector<16x128xf32>
    %299 = arith.addf %297, %298 : vector<16x128xf32>
    %c0_47 = arith.constant 0 : index
    %c0_48 = arith.constant 0 : index
    %300 = vector.load %arg7[%c0_47, %c0_48] : memref<16x128xf32, #tpu.memory_space<vmem>>, vector<16x128xf32>
    tpu.vector_store %arg7[%c0_47, %c0_48], %299 {strides = array<i32>} : memref<16x128xf32, #tpu.memory_space<vmem>>, vector<16x128xf32>,
    return
  }
  func.func @transform_0(%arg0: i32, %arg1: memref<8xf32, #tpu.memory_space<smem>>) -> (i32, i32) {
    %c0_i32 = arith.constant 0 : i32
    %c0_i32_0 = arith.constant 0 : i32
    return %arg0, %c0_i32 : i32, i32
  }
  func.func @transform_1(%arg0: i32, %arg1: memref<8xf32, #tpu.memory_space<smem>>) -> (i32, i32) {
    %c0_i32 = arith.constant 0 : i32
    %c0_i32_0 = arith.constant 0 : i32
    %c0_i32_1 = arith.constant 0 : i32
    return %c0_i32, %c0_i32_0 : i32, i32
  }
  func.func @transform_2(%arg0: i32, %arg1: memref<8xf32, #tpu.memory_space<smem>>) -> (i32, i32) {
    %c0_i32 = arith.constant 0 : i32
    %c0_i32_0 = arith.constant 0 : i32
    %c0_i32_1 = arith.constant 0 : i32
    return %c0_i32, %c0_i32_0 : i32, i32
  }
  func.func @transform_3(%arg0: i32, %arg1: memref<8xf32, #tpu.memory_space<smem>>) -> (i32, i32) {
    %c0_i32 = arith.constant 0 : i32
    %c0_i32_0 = arith.constant 0 : i32
    %c0_i32_1 = arith.constant 0 : i32
    return %c0_i32, %c0_i32_0 : i32, i32
  }
  func.func @transform_4(%arg0: i32, %arg1: memref<8xf32, #tpu.memory_space<smem>>) -> (i32, i32) {
    %c0_i32 = arith.constant 0 : i32
    %c0_i32_0 = arith.constant 0 : i32
    %c0_i32_1 = arith.constant 0 : i32
    return %c0_i32, %c0_i32_0 : i32, i32
  }
  func.func @transform_5(%arg0: i32, %arg1: memref<8xf32, #tpu.memory_space<smem>>) -> (i32, i32) {
    %c0_i32 = arith.constant 0 : i32
    %c0_i32_0 = arith.constant 0 : i32
    return %arg0, %c0_i32 : i32, i32
  }
}

</mosaic_0001>

<bundles_post_ra>
// kernel: tpu_custom_call.1
= control target key start
LH: loop header
LB: loop body
LE: loop exit
PB: predicated region body
PF: predicated region fallthrough
CT: control target
= control target key end

     0   :  { %s1921_s24 = smov [#allocation3]   ;;  %s2422_s0 = inlined_call_operand.vmem [shape: f32[8], index: 0, kind: input, shape index: {}]   ;;  %s2423_s1 = inlined_call_operand.vmem [shape: bf16[32,32], index: 1, kind: input, shape index: {}]   ;;  %s2424_s2 = inlined_call_operand.vmem [shape: bf16[32,8], index: 2, kind: input, shape index: {}]   ;;  %s2425_s3 = inlined_call_operand.hbm [shape: f32[5,128], index: 3, kind: input, shape index: {}]   ;;  %s2426_s4 = inlined_call_operand.hbm [shape: bf16[32,128], index: 4, kind: input, shape index: {}]   ;;  %s2427_s5 = inlined_call_operand.hbm [shape: bf16[32,128], index: 5, kind: input, shape index: {}]   ;;  %s2428_s6 = inlined_call_operand.hbm [shape: f32[32,128], index: 6, kind: output, shape index: {}]  }
   0x1   :  { %s12_s23 = sshll.u32 %s2422_s0, 4  ;;  %s13_s23 = int_to_ptr.vmem [resolvable:$true] %s12_s23 }
   0x2   :  { %15 = dma.vmem_to_smem %s13_s23, 16, %s1921_s24, [#allocation2] }
   0x3   :  { %1891 = dma.done.wait [#allocation2], 16 }
   0x4   :  { %1892 = vsyncadd [#allocation2], 4294967280 }
   0x5   :  { %18 = sfence }
   0x6   :  { %19 = vsyncpa [#allocation5], 0 }
   0x7   :  { %20 = vsyncpa [#allocation8], 0 }
   0x8   :  { %21 = vsyncpa [#allocation6], 0 }
   0x9   :  { %23 = vsyncpa [#allocation6 + $0x1], 0  ;;  %s1977_s25 = smov 0   ;;  %s1979_s26 = smov 0  }
   0xa   :  { %s1981_s27 = smov 0   ;;  %s1983_s28 = smov 0  }
   0xb LB: > { %s1998_s0 = sadd.s32 4294967295, %s1919_s28   ;;  %s1454_s29 = sadd.s32 4294967294, %s1919_s28   ;;  %s1919_s28 = sphi %s1983_s28, %s2436_s28   ;;  %s1915_s27 = sphi %s1981_s27, %s2435_s27   ;;  %s1911_s26 = sphi %s1979_s26, %s2434_s26   ;;  %s1907_s25 = sphi %s1977_s25, %s2433_s25  }
   0xc   : > { %s2002_s30 = sadd.s32 1, %s1919_s28   ;;  %s146_s7 = sadd.s32 1, %s1915_s27 }
   0xd   : > { %s143_s8 = ssub.s32 %s1919_s28, %s2002_s30  ;;  %p156_p0 = scmp.ne.s32.totalorder %s1915_s27, %s1911_s26 }
   0xe   : > { %p144_p1 = scmp.eq.s32.totalorder %s143_s8, 0  ;;  %p157_p2 = scmp.eq.s32.totalorder %s1998_s0, 1 }
   0xf   : > { %p162_p3 = scmp.ne.s32.totalorder %s1911_s26, %s1907_s25  ;;  %p163_p4 = scmp.eq.s32.totalorder %s1454_s29, 1 }
  0x10   : > { %s2013_s9 = scalar_select %p144_p1, %s1915_s27, %s146_s7  }
  0x11   : > { %p2015_p5 = por %p157_p2, %p156_p0  ;;  %p2019_p6 = por %p163_p4, %p162_p3 }
  0x12   : > { %p1455_p7 = scmp.ge.s32.totalorder %s1919_s28, 1  ;;  %p170_p8 = scmp.lt.s32.totalorder %s1919_s28, 3 }
  0x13   : > { %p1576_p9 = scmp.eq.s32.totalorder %s1998_s0, 0  ;;  %s196_s15 = sshll.u32 %s2426_s4, 4  ;;  %s197_s15 = int_to_ptr.hbm [resolvable:$true] %s196_s15 }
  0x14   : > { %p2026_p10 = pnand %p1455_p7, %p170_p8  ;;  %s1922_s16 = smov [#allocation7]  }
  0x15   : > { %s198_s17 = sshll.u32 %s1922_s16, 4  ;;  %s185_s21 = sshll.u32 %s2425_s3, 4  ;;  %s199_s17 = int_to_ptr.vmem [resolvable:$true] %s198_s17  ;;  %s186_s21 = int_to_ptr.hbm [resolvable:$true] %s185_s21 }
  0x16   : > { %p1562_p11 = pneg %p2026_p10  ;;  %s1923_s22 = smov 64  }
  0x17   : > { %s1924_s23 = smov 4   ;;  %s1925_s24 = smov [#allocation4]  }
  0x18   : > { %p2037_p12 = pnand %p1576_p9, %p1562_p11  ;;  %s187_s29 = sshll.u32 %s1925_s24, 4  ;;  %s188_s29 = int_to_ptr.vmem [resolvable:$true] %s187_s29 }
  0x19   : > { %s210_s13 = sshll.u32 %s2427_s5, 4  ;;  %s1926_s14 = smov [#allocation9]   ;;  %s211_s13 = int_to_ptr.hbm [resolvable:$true] %s210_s13 }
  0x1a   : > { %1568 = dma.hbm_to_vmem [thread:$0]  (!%p2037_p12), %s197_s15, 256, %s199_s17, [#allocation8], %s1923_s22, %s1923_s22, %s1924_s23  }
  0x1b   : > { %1565 = dma.hbm_to_vmem [thread:$0]  (!%p2037_p12), %s186_s21, 128, %s188_s29, [#allocation5]  }
  0x1c   : > { %s212_s16 = sshll.u32 %s1926_s14, 4  ;;  %237 = sbr.rel (%p2026_p10) target bundleno = 3757 (0xead), region = 40  ;;  %s213_s16 = int_to_ptr.vmem [resolvable:$true] %s212_s16 }
  0x1d   : > { %1571 = dma.hbm_to_vmem [thread:$0]  (!%p2037_p12), %s211_s13, 256, %s213_s16, [#allocation8], %s1923_s22, %s1923_s22, %s1924_s23  }
  0x21   : > { %1894 = dma.done.wait (%p1576_p9), [#allocation5], 128  }
  0x22   : > { %1896 = vsyncadd (%p1576_p9), [#allocation5], 4294967168 }
  0x23   : > { %1898 = dma.done.wait (%p1576_p9), [#allocation8], 512  }
  0x24   : > { %1900 = vsyncadd (%p1576_p9), [#allocation8], 4294966784  ;;  %s1465_s15 = sshll.u32 %s1998_s0, 1  ;;  %v1927_v0 = vmov 0   ;;  %v1542_v1 = vld [vmem:[%s2424_s2 + $0x8] sm:$0xff]  ;;  %v2067_v2 = vld [vmem:[#allocation7 + $0x8] sm:$0xff] }
  0x25   : > { %p277_p13 = scmp.lt.s32.totalorder %s1465_s15, 3  ;;  %1633 = vset.pattern.permute.xlu0 %v1927_v0  ;;  %317 = vmatpush.bf16.msra.mxu0 %v1542_v1  ;;  %v1541_v3 = vld [vmem:[%s2424_s2] sm:$0xff]  ;;  %v2076_v4 = vld [vmem:[#allocation7] sm:$0xff]  ;;  %vm307_vm0 = vcmask 261120   ;;  %v1928_v6 = vmov 1   ;;  %s1929_s24 = smov 64  }
  0x26   : > { %371 = vmatpush.bf16.msra.mxu1 %v2067_v2  ;;  %492 = vmatpush.bf16.msra.mxu3 %v2067_v2  ;;  %v2097_v9 = vld [vmem:[#allocation4] sm:$0x1f]  ;;  %s1930_s29 = smov 96   ;;  %s1495_s7 = sld [smem:[#allocation3 + $0x1]] }
  0x27   : > { %s2438_s15 = smov (!%p277_p13, %s1465_s15), 3  ;;  %1634 = vset.pattern.permute.xlu2 %v1928_v6  ;;  %433 = vrot.lane.b32.xlu1 %v2067_v2, %s1929_s24  ;;  %v2100_v10 = vperm.slane %v2097_v9, 0  ;;  %v2103_v11 = vperm.slane %v2097_v9, 1  ;;  %v2133_v54 = vperm.slane %v2097_v9, 2  ;;  %v2138_v56 = vperm.slane %v2097_v9, 3  ;;  %s464_s8 = sld [smem:[#allocation3]] }
  0x28   : > { %s1466_s12 = sshll.u32 %s2438_s15, 2  ;;  %s1500_s13 = sld [smem:[#allocation3 + $0x2]] }
  0x29   : > { %s280_s23 = scalar_lea.vmem %s2423_s1, %s1466_s12  ;;  %318 = vmatpush.bf16.msra.mxu0 %v1541_v3  ;;  %s2350_s14 = sld [smem:[#allocation3 + $0x3]] }
  0x2a   : > { %v1540_v5 = vld [vmem:[%s280_s23] sm:$0xff]  ;;  %372 = vmatpush.bf16.msra.mxu1 %v2076_v4  ;;  %493 = vmatpush.bf16.msra.mxu3 %v2076_v4  ;;  %s2353_s16 = sld [smem:[#allocation3 + $0x4]]  ;;  %s273_s18 = sand.u32 1, %s1911_s26  }
  0x2b   : > { %s2355_s15 = sld [smem:[#allocation3 + $0x5]]  ;;  %s1464_s19 = sshll.u32 %s273_s18, 4 }
  0x2c   : > { %1479 = vmatmul.msk.bf16.vlgmr.msra.gmra.mxu0 %vm307_vm0, %v1540_v5  ;;  %s2360_s12 = sld [smem:[#allocation3 + $0x6]]  ;;  %s1547_s20 = sshll.u32 %s1998_s0, 4 }
  0x2d   : > { %373 = vmatmul.bf16.vlgmr.msra.gmra.mxu1 %v1927_v0  ;;  %s2366_s17 = sld [smem:[#allocation3 + $0x7]]  ;;  %s275_s21 = scalar_lea.vmem [#allocation10], %s1464_s19 }
  0x2e   : > { %612 = vmatpush.bf16.msrb.mxu1 %v2067_v2  ;;  %732 = vmatpush.bf16.msrb.mxu3 %v2067_v2 }
  0x2f   : > { %431 = vrot.lane.b32.xlu1 %v2076_v4, %s1929_s24  ;;  %s1357_s24 = scalar_lea.hbm %s2428_s6, %s1547_s20 }
  0x32   : > { %613 = vmatpush.bf16.msrb.mxu1 %v2076_v4  ;;  %733 = vmatpush.bf16.msrb.mxu3 %v2076_v4 }
  0x36   : > { %852 = vmatpush.bf16.msra.mxu1 %v2067_v2 }
  0x3a   : > { %853 = vmatpush.bf16.msra.mxu1 %v2076_v4 }
  0x99   : > { %v2115_v27 = vpop.permute.xlu1 %433 }
  0x9a   : > { %446 = vmatpush.bf16.msra.mxu2 %v2115_v27  ;;  %564 = vmatpush.bf16.msrb.mxu0 %v2115_v27 }
  0xa1   : > { %v2119_v33 = vpop.permute.xlu1 %431 }
  0xa2   : > { %447 = vmatpush.bf16.msra.mxu2 %v2119_v33  ;;  %565 = vmatpush.bf16.msrb.mxu0 %v2119_v33 }
  0xa6   : > { %684 = vmatpush.bf16.msrb.mxu2 %v2115_v27  ;;  %804 = vmatpush.bf16.msra.mxu0 %v2115_v27 }
  0xa9   : > { %v2090_v7 = vpop.f32.mrf.mxu0 }
  0xaa   : > { %336 = vperm.xlu0 %1633, %v2090_v7   ;;  %v374_v14 = vpop.f32.mrf.mxu1  ;;  %685 = vmatpush.bf16.msrb.mxu2 %v2119_v33 }
  0xab   : > { %805 = vmatpush.bf16.msra.mxu0 %v2119_v33 }
  0xb1   : > { %v2093_v8 = vpop.f32.mrf.mxu0 }
  0xb2   : > { %341 = vperm.xlu0 %1633, %v2093_v8   ;;  %v376_v21 = vpop.f32.mrf.mxu1 }
  0xba   : > { %1635 = vset.pattern.permute.xlu0 %v1928_v6 }
  0xbb   : > { %475 = vperm.xlu0 %1635, %v2093_v8  }
 0x11c   : > { %v2105_v12 = vpop.permute.xlu0 %336 }
 0x11d   : > { %v345_v13 = vmul.f32 %v2100_v10, %v2105_v12  ;;  %v420_v55 = vmul.f32 %v2133_v54, %v2105_v12 }
 0x11f   : > { %v348_v15 = vadd.f32 %v2103_v11, %v345_v13  ;;  %v423_v57 = vadd.f32 %v2138_v56, %v420_v55 }
 0x121   : > { %v379_v16 = vadd.f32 %v374_v14, %v348_v15 }
 0x123   : > { %v1488_v17 = vmul.f32 -1.442695, %v379_v16 }
 0x124   : > { %v2110_v18 = vpop.permute.xlu0 %341 }
 0x125   : > { %1648 = vpow2.f32 %v1488_v17  ;;  %v346_v19 = vmul.f32 %v2100_v10, %v2110_v18  ;;  %v421_v60 = vmul.f32 %v2133_v54, %v2110_v18 }
 0x127   : > { %v349_v20 = vadd.f32 %v2103_v11, %v346_v19  ;;  %v424_v61 = vadd.f32 %v2138_v56, %v421_v60 }
 0x129   : > { %v380_v22 = vadd.f32 %v376_v21, %v349_v20  ;;  %v1931_v20 = vmov 2  }
 0x12a   : > { %1636 = vset.pattern.permute.xlu1 %v1931_v20 }
 0x12b   : > { %v1649_v23 = vpop.eup %1648  ;;  %v1489_v24 = vmul.f32 -1.442695, %v380_v22 }
 0x12c   : > { %v387_v25 = vadd.f32 1.0, %v1649_v23 }
 0x12d   : > { %1650 = vpow2.f32 %v1489_v24  ;;  %v2158_v18 = vpop.permute.xlu0 %475 }
 0x12e   : > { %1652 = vrcp.f32 %v387_v25  ;;  %v400_v37 = vand.u32 2147483648, %v387_v25  ;;  %vm394_vm2 = vweird.f32 %v387_v25  ;;  %v398_v38 = vand.u32 2147483647, %v387_v25 }
 0x12f   : > { %v479_v22 = vmul.f32 %v2158_v18, %v2100_v10 }
 0x130   : > { %v401_v44 = vor.u32 1.1754944e-38, %v400_v37  ;;  %vm399_vm5 = vcmp.eq.f32.partialorder %v398_v38, 8.507059e+37 }
 0x131   : > { %v481_v24 = vadd.f32 %v479_v22, %v2103_v11 }
 0x133   : > { %v1651_v26 = vpop.eup %1650 }
 0x134   : > { %v1653_v28 = vpop.eup %1652  ;;  %v388_v29 = vadd.f32 1.0, %v1651_v26 }
 0x135   : > { %v390_v30 = vmul.f32 %v1653_v28, %v387_v25  ;;  %vm395_vm1 = vweird.f32 %v1653_v28 }
 0x136   : > { %1654 = vrcp.f32 %v388_v29  ;;  %vm396_vm3 = vmor %vm394_vm2, %vm395_vm1  ;;  %v415_v40 = vand.u32 2147483648, %v388_v29  ;;  %v413_v43 = vand.u32 2147483647, %v388_v29  ;;  %vm409_vm6 = vweird.f32 %v388_v29 }
 0x137   : > { %v391_v31 = vsub.f32 1.0, %v390_v30 }
 0x138   : > { %v416_v47 = vor.u32 1.1754944e-38, %v415_v40  ;;  %vm414_vm8 = vcmp.eq.f32.partialorder %v413_v43, 8.507059e+37 }
 0x139   : > { %v392_v32 = vmul.f32 %v1653_v28, %v391_v31  ;;  %v1932_v31 = vmov 3  }
 0x13a   : > { %1639 = vset.pattern.permute.xlu0 %v1932_v31 }
 0x13b   : > { %v393_v35 = vadd.f32 %v1653_v28, %v392_v32 }
 0x13c   : > { %v1655_v34 = vpop.eup %1654 }
 0x13d   : > { %v405_v36 = vmul.f32 %v1655_v34, %v388_v29  ;;  %v397_v41 = vsel %vm396_vm3, %v1653_v28, %v393_v35  ;;  %vm410_vm4 = vweird.f32 %v1655_v34 }
 0x13e   : > { %v402_v46 = vsel %vm399_vm5, %v401_v44, %v397_v41  ;;  %vm411_vm7 = vmor %vm409_vm6, %vm410_vm4 }
 0x13f   : > { %v406_v39 = vsub.f32 1.0, %v405_v36  ;;  %v425_v50 = vmul.f32 0.0, %v402_v46  ;;  %v458_v62 = vsub.f32 1.0, %v402_v46 }
 0x141   : > { %v407_v42 = vmul.f32 %v1655_v34, %v406_v39 }
 0x143   : > { %v408_v45 = vadd.f32 %v1655_v34, %v407_v42 }
 0x145   : > { %v412_v48 = vsel %vm411_vm7, %v1655_v34, %v408_v45 }
 0x146   : > { %v417_v49 = vsel %vm414_vm8, %v416_v47, %v412_v48 }
 0x147   : > { %v426_v51 = vmul.f32 0.0, %v417_v49  ;;  %v459_v5 = vsub.f32 1.0, %v417_v49 }
 0x149   : > { %v427_v52 = vpack.c.bf16 %v426_v51, %v425_v50 }
 0x14b   : > { %429 = vrot.lane.b32.xlu2 %v427_v52, %s1930_s29 }
 0x153   : > { %471 = vperm.xlu2 %1634, %v2090_v7  }
 0x15b   : > { %1637 = vset.pattern.permute.xlu2 %v1931_v20 }
 0x1a5   : > { %v430_v53 = vpop.permute.xlu2 %429 }
 0x1a6   : > { %1490 = vmatmul.msk.bf16.vlgmr.msra.gmra.mxu2 %vm307_vm0, %v430_v53 }
 0x1a7   : > { %924 = vmatpush.bf16.msra.mxu2 %v2115_v27 }
 0x1ab   : > { %925 = vmatpush.bf16.msra.mxu2 %v2119_v33 }
 0x1ad   : > { %v2153_v15 = vpop.permute.xlu2 %471 }
 0x1ae   : > { %v478_v16 = vmul.f32 %v2153_v15, %v2100_v10 }
 0x1b0   : > { %v480_v17 = vadd.f32 %v478_v16, %v2103_v11 }
 0x229   : > { %v449_v58 = vpop.f32.mrf.mxu2 }
 0x22a   : > { %v454_v59 = vadd.f32 %v449_v58, %v423_v57 }
 0x22c   : > { %1656 = vtanh.f32 %v454_v59 }
 0x231   : > { %v451_v63 = vpop.f32.mrf.mxu2 }
 0x232   : > { %v1657_v0 = vpop.eup %1656  ;;  %v455_v1 = vadd.f32 %v451_v63, %v424_v61 }
 0x233   : > { %v460_v3 = vmul.f32 %v1657_v0, %v458_v62  ;;  %v540_v62 = vmul.f32 %v2153_v15, %v2133_v54 }
 0x234   : > { %1658 = vtanh.f32 %v455_v1  ;;  %v541_v1 = vmul.f32 %v2158_v18, %v2133_v54 }
 0x235   : > { %v2144_v12 = vadd.f32 %v460_v3, %v425_v50  ;;  %v542_v0 = vadd.f32 %v540_v62, %v2138_v56 }
 0x23a   : > { %v1659_v6 = vpop.eup %1658 }
 0x23b   : > { %v461_v9 = vmul.f32 %v1659_v6, %v459_v5  ;;  %v543_v5 = vadd.f32 %v541_v1, %v2138_v56 }
 0x23d   : > { %v2146_v13 = vadd.f32 %v461_v9, %v426_v51 }
 0x23f   : > { %v482_v14 = vpack.c.bf16 %v2146_v13, %v2144_v12 }
 0x241   : > { %1491 = vmatmul.msk.bf16.vlgmr.msra.gmra.mxu3 %vm307_vm0, %v482_v14 }
 0x242   : > { %972 = vmatpush.bf16.msra.mxu3 %v2067_v2 }
 0x246   : > { %973 = vmatpush.bf16.msra.mxu3 %v2076_v4 }
 0x2c4   : > { %v495_v19 = vpop.f32.mrf.mxu3 }
 0x2c5   : > { %v500_v21 = vadd.f32 %v495_v19, %v480_v17 }
 0x2c7   : > { %v1492_v23 = vmul.f32 -1.442695, %v500_v21 }
 0x2c9   : > { %1660 = vpow2.f32 %v1492_v23 }
 0x2cc   : > { %v497_v25 = vpop.f32.mrf.mxu3 }
 0x2cd   : > { %v501_v26 = vadd.f32 %v497_v25, %v481_v24 }
 0x2cf   : > { %v1661_v28 = vpop.eup %1660  ;;  %v1493_v29 = vmul.f32 -1.442695, %v501_v26 }
 0x2d0   : > { %v508_v30 = vadd.f32 1.0, %v1661_v28 }
 0x2d1   : > { %1662 = vpow2.f32 %v1493_v29 }
 0x2d2   : > { %1664 = vrcp.f32 %v508_v30  ;;  %v521_v38 = vand.u32 2147483648, %v508_v30  ;;  %v519_v40 = vand.u32 2147483647, %v508_v30  ;;  %vm515_vm10 = vweird.f32 %v508_v30 }
 0x2d4   : > { %v522_v43 = vor.u32 1.1754944e-38, %v521_v38  ;;  %vm520_vm12 = vcmp.eq.f32.partialorder %v519_v40, 8.507059e+37 }
 0x2d7   : > { %v1663_v32 = vpop.eup %1662 }
 0x2d8   : > { %v1665_v34 = vpop.eup %1664  ;;  %v509_v35 = vadd.f32 1.0, %v1663_v32 }
 0x2d9   : > { %v511_v36 = vmul.f32 %v1665_v34, %v508_v30  ;;  %vm516_vm9 = vweird.f32 %v1665_v34 }
 0x2da   : > { %1666 = vrcp.f32 %v509_v35  ;;  %vm517_vm11 = vmor %vm515_vm10, %vm516_vm9  ;;  %v536_v48 = vand.u32 2147483648, %v509_v35  ;;  %v534_v50 = vand.u32 2147483647, %v509_v35  ;;  %vm530_vm14 = vweird.f32 %v509_v35 }
 0x2db   : > { %v512_v37 = vsub.f32 1.0, %v511_v36 }
 0x2dc   : > { %v537_v52 = vor.u32 1.1754944e-38, %v536_v48  ;;  %vm535_vm1 = vcmp.eq.f32.partialorder %v534_v50, 8.507059e+37 }
 0x2dd   : > { %v513_v39 = vmul.f32 %v1665_v34, %v512_v37 }
 0x2df   : > { %v514_v41 = vadd.f32 %v1665_v34, %v513_v39 }
 0x2e0   : > { %v1667_v42 = vpop.eup %1666 }
 0x2e1   : > { %v518_v44 = vsel %vm517_vm11, %v1665_v34, %v514_v41  ;;  %v526_v45 = vmul.f32 %v1667_v42, %v509_v35  ;;  %vm531_vm13 = vweird.f32 %v1667_v42 }
 0x2e2   : > { %v523_v46 = vsel %vm520_vm12, %v522_v43, %v518_v44  ;;  %vm532_vm15 = vmor %vm530_vm14, %vm531_vm13 }
 0x2e3   : > { %546 = vrot.lane.b32.xlu1 %v523_v46, %s1930_s29  ;;  %v527_v47 = vsub.f32 1.0, %v526_v45  ;;  %v578_v16 = vsub.f32 1.0, %v523_v46  ;;  %v576_v15 = vmul.f32 %v523_v46, %v2144_v12 }
 0x2e5   : > { %v528_v49 = vmul.f32 %v1667_v42, %v527_v47 }
 0x2e7   : > { %v529_v51 = vadd.f32 %v1667_v42, %v528_v49 }
 0x2e9   : > { %v533_v53 = vsel %vm532_vm15, %v1667_v42, %v529_v51 }
 0x2ea   : > { %v538_v55 = vsel %vm535_vm1, %v537_v52, %v533_v53 }
 0x2eb   : > { %591 = vperm.xlu1 %1636, %v2090_v7   ;;  %548 = vrot.lane.b32.xlu2 %v538_v55, %s1930_s29  ;;  %v579_v17 = vsub.f32 1.0, %v538_v55  ;;  %v577_v21 = vmul.f32 %v538_v55, %v2146_v13 }
 0x2f3   : > { %595 = vperm.xlu2 %1637, %v2093_v8  }
 0x2fb   : > { %1638 = vset.pattern.permute.xlu2 %v1932_v31 }
 0x2fc   : > { %711 = vperm.xlu2 %1638, %v2090_v7  }
 0x345   : > { %v549_v57 = vpop.permute.xlu2 %548 }
 0x346   : > { %v553_v59 = vmul.f32 %v549_v57, %v2146_v13 }
 0x34d   : > { %v596_v29 = vpop.permute.xlu2 %595 }
 0x34e   : > { %v599_v32 = vmul.f32 %v596_v29, %v2100_v10 }
 0x350   : > { %v601_v35 = vadd.f32 %v599_v32, %v2103_v11 }
 0x355   : > { %v547_v58 = vpop.permute.xlu1 %546 }
 0x356   : > { %v552_v60 = vmul.f32 %v547_v58, %v2144_v12 }
 0x358   : > { %v554_v61 = vpack.c.bf16 %v553_v59, %v552_v60 }
 0x35a   : > { %1494 = vmatmul.msk.bf16.vlgmr.msrb.gmra.mxu0 %vm307_vm0, %v554_v61 }
 0x35b   : > { %1044 = vmatpush.bf16.msrb.mxu0 %v2115_v27 }
 0x35d   : > { %v592_v25 = vpop.permute.xlu1 %591 }
 0x35e   : > { %v598_v26 = vmul.f32 %v592_v25, %v2100_v10 }
 0x35f   : > { %1045 = vmatpush.bf16.msrb.mxu0 %v2119_v33 }
 0x360   : > { %v600_v28 = vadd.f32 %v598_v26, %v2103_v11 }
 0x3d7   : > { %v567_v63 = vpop.f32.mrf.mxu0 }
 0x3d8   : > { %v572_v3 = vadd.f32 %v567_v63, %v542_v0 }
 0x3da   : > { %1668 = vtanh.f32 %v572_v3 }
 0x3df   : > { %v569_v6 = vpop.f32.mrf.mxu0 }
 0x3e0   : > { %v573_v9 = vadd.f32 %v569_v6, %v543_v5  ;;  %v1669_v14 = vpop.eup %1668 }
 0x3e1   : > { %v580_v19 = vmul.f32 %v1669_v14, %v578_v16  ;;  %v660_v14 = vmul.f32 %v592_v25, %v2133_v54 }
 0x3e2   : > { %1670 = vtanh.f32 %v573_v9 }
 0x3e3   : > { %v2181_v23 = vadd.f32 %v580_v19, %v576_v15  ;;  %v661_v19 = vmul.f32 %v596_v29, %v2133_v54 }
 0x3e5   : > { %v663_v15 = vadd.f32 %v661_v19, %v2138_v56 }
 0x3e8   : > { %v1671_v20 = vpop.eup %1670 }
 0x3e9   : > { %v581_v22 = vmul.f32 %v1671_v20, %v579_v17  ;;  %v662_v17 = vadd.f32 %v660_v14, %v2138_v56 }
 0x3eb   : > { %v2183_v18 = vadd.f32 %v581_v22, %v577_v21 }
 0x3ed   : > { %v602_v24 = vpack.c.bf16 %v2183_v18, %v2181_v23 }
 0x3ef   : > { %1496 = vmatmul.msk.bf16.vlgmr.msrb.gmra.mxu1 %vm307_vm0, %v602_v24 }
 0x3f0   : > { %1092 = vmatpush.bf16.msrb.mxu1 %v2067_v2 }
 0x3f4   : > { %1093 = vmatpush.bf16.msrb.mxu1 %v2076_v4 }
 0x46c   : > { %v615_v30 = vpop.f32.mrf.mxu1 }
 0x46d   : > { %v620_v31 = vadd.f32 %v615_v30, %v600_v28 }
 0x46f   : > { %v1497_v34 = vmul.f32 -1.442695, %v620_v31 }
 0x471   : > { %1672 = vpow2.f32 %v1497_v34 }
 0x474   : > { %v617_v36 = vpop.f32.mrf.mxu1 }
 0x475   : > { %v621_v37 = vadd.f32 %v617_v36, %v601_v35 }
 0x477   : > { %v1673_v38 = vpop.eup %1672  ;;  %v1498_v39 = vmul.f32 -1.442695, %v621_v37  ;;  %v2217_v37 = vpop.permute.xlu2 %711 }
 0x478   : > { %v628_v40 = vadd.f32 1.0, %v1673_v38  ;;  %v718_v38 = vmul.f32 %v2217_v37, %v2100_v10 }
 0x479   : > { %1674 = vpow2.f32 %v1498_v39 }
 0x47a   : > { %1676 = vrcp.f32 %v628_v40  ;;  %v641_v46 = vand.u32 2147483648, %v628_v40  ;;  %v639_v48 = vand.u32 2147483647, %v628_v40  ;;  %vm635_vm3 = vweird.f32 %v628_v40 }
 0x47b   : > { %v720_v39 = vadd.f32 %v718_v38, %v2103_v11 }
 0x47c   : > { %v642_v51 = vor.u32 1.1754944e-38, %v641_v46  ;;  %vm640_vm5 = vcmp.eq.f32.partialorder %v639_v48, 8.507059e+37 }
 0x47f   : > { %v1675_v41 = vpop.eup %1674 }
 0x480   : > { %v1677_v42 = vpop.eup %1676  ;;  %v629_v43 = vadd.f32 1.0, %v1675_v41 }
 0x481   : > { %v631_v44 = vmul.f32 %v1677_v42, %v628_v40  ;;  %vm636_vm2 = vweird.f32 %v1677_v42 }
 0x482   : > { %1678 = vrcp.f32 %v629_v43  ;;  %vm637_vm4 = vmor %vm635_vm3, %vm636_vm2  ;;  %v656_v58 = vand.u32 2147483648, %v629_v43  ;;  %v654_v60 = vand.u32 2147483647, %v629_v43  ;;  %vm650_vm7 = vweird.f32 %v629_v43 }
 0x483   : > { %v632_v45 = vsub.f32 1.0, %v631_v44 }
 0x484   : > { %v657_v62 = vor.u32 1.1754944e-38, %v656_v58  ;;  %vm655_vm9 = vcmp.eq.f32.partialorder %v654_v60, 8.507059e+37 }
 0x485   : > { %v633_v47 = vmul.f32 %v1677_v42, %v632_v45 }
 0x487   : > { %v634_v49 = vadd.f32 %v1677_v42, %v633_v47 }
 0x488   : > { %v1679_v50 = vpop.eup %1678 }
 0x489   : > { %v638_v52 = vsel %vm637_vm4, %v1677_v42, %v634_v49  ;;  %v646_v53 = vmul.f32 %v1679_v50, %v629_v43  ;;  %vm651_vm6 = vweird.f32 %v1679_v50  ;;  %v1933_v42 = vmov 4  }
 0x48a   : > { %v643_v55 = vsel %vm640_vm5, %v642_v51, %v638_v52  ;;  %vm652_vm8 = vmor %vm650_vm7, %vm651_vm6  ;;  %1640 = vset.pattern.permute.xlu1 %v1933_v42  ;;  %1641 = vset.pattern.permute.xlu2 %v1933_v42 }
 0x48b   : > { %666 = vrot.lane.b32.xlu0 %v643_v55, %s1930_s29  ;;  %v647_v57 = vsub.f32 1.0, %v646_v53  ;;  %v698_v26 = vsub.f32 1.0, %v643_v55  ;;  %v696_v32 = vmul.f32 %v643_v55, %v2181_v23 }
 0x48d   : > { %v648_v59 = vmul.f32 %v1679_v50, %v647_v57 }
 0x48f   : > { %v649_v61 = vadd.f32 %v1679_v50, %v648_v59 }
 0x491   : > { %v653_v63 = vsel %vm652_vm8, %v1679_v50, %v649_v61  ;;  %v1934_v50 = vmov 5  }
 0x492   : > { %v658_v0 = vsel %vm655_vm9, %v657_v62, %v653_v63 }
 0x493   : > { %715 = vperm.xlu0 %1639, %v2093_v8   ;;  %668 = vrot.lane.b32.xlu1 %v658_v0, %s1930_s29  ;;  %v699_v28 = vsub.f32 1.0, %v658_v0  ;;  %v697_v25 = vmul.f32 %v658_v0, %v2183_v18 }
 0x49b   : > { %1643 = vset.pattern.permute.xlu0 %v1934_v50 }
 0x4fd   : > { %v667_v1 = vpop.permute.xlu0 %666 }
 0x4fe   : > { %v672_v5 = vmul.f32 %v667_v1, %v2181_v23 }
 0x505   : > { %v669_v3 = vpop.permute.xlu1 %668  ;;  %v2222_v40 = vpop.permute.xlu0 %715 }
 0x506   : > { %v673_v6 = vmul.f32 %v669_v3, %v2183_v18  ;;  %v719_v44 = vmul.f32 %v2222_v40, %v2100_v10 }
 0x508   : > { %v674_v9 = vpack.c.bf16 %v673_v6, %v672_v5 }
 0x50a   : > { %1499 = vmatmul.msk.bf16.vlgmr.msrb.gmra.mxu2 %vm307_vm0, %v674_v9 }
 0x50b   : > { %1164 = vmatpush.bf16.msrb.mxu2 %v2115_v27 }
 0x50f   : > { %1165 = vmatpush.bf16.msrb.mxu2 %v2119_v33 }
 0x58d   : > { %v687_v16 = vpop.f32.mrf.mxu2 }
 0x58e   : > { %v692_v20 = vadd.f32 %v687_v16, %v662_v17 }
 0x590   : > { %1680 = vtanh.f32 %v692_v20 }
 0x595   : > { %v689_v21 = vpop.f32.mrf.mxu2 }
 0x596   : > { %v693_v22 = vadd.f32 %v689_v21, %v663_v15  ;;  %v1681_v24 = vpop.eup %1680 }
 0x597   : > { %v700_v30 = vmul.f32 %v1681_v24, %v698_v26 }
 0x598   : > { %1682 = vtanh.f32 %v693_v22 }
 0x599   : > { %v2208_v35 = vadd.f32 %v700_v30, %v696_v32  ;;  %v781_v32 = vmul.f32 %v2222_v40, %v2133_v54 }
 0x59e   : > { %v1683_v31 = vpop.eup %1682 }
 0x59f   : > { %v701_v34 = vmul.f32 %v1683_v31, %v699_v28  ;;  %v780_v28 = vmul.f32 %v2217_v37, %v2133_v54 }
 0x5a1   : > { %v2210_v29 = vadd.f32 %v701_v34, %v697_v25  ;;  %v782_v31 = vadd.f32 %v780_v28, %v2138_v56  ;;  %v783_v34 = vadd.f32 %v781_v32, %v2138_v56 }
 0x5a3   : > { %v722_v36 = vpack.c.bf16 %v2210_v29, %v2208_v35 }
 0x5a5   : > { %1501 = vmatmul.msk.bf16.vlgmr.msrb.gmra.mxu3 %vm307_vm0, %v722_v36 }
 0x5a6   : > { %1212 = vmatpush.bf16.msrb.mxu3 %v2067_v2 }
 0x5aa   : > { %1213 = vmatpush.bf16.msrb.mxu3 %v2076_v4  ;;  %v721_v4 = vadd.f32 %v719_v44, %v2103_v11 }
 0x628   : > { %v735_v41 = vpop.f32.mrf.mxu3 }
 0x629   : > { %v740_v43 = vadd.f32 %v735_v41, %v720_v39 }
 0x62b   : > { %v1502_v2 = vmul.f32 -1.442695, %v740_v43 }
 0x62d   : > { %1684 = vpow2.f32 %v1502_v2 }
 0x630   : > { %v737_v45 = vpop.f32.mrf.mxu3 }
 0x631   : > { %v741_v46 = vadd.f32 %v737_v45, %v721_v4 }
 0x633   : > { %v1685_v47 = vpop.eup %1684  ;;  %v1503_v48 = vmul.f32 -1.442695, %v741_v46 }
 0x634   : > { %v748_v49 = vadd.f32 1.0, %v1685_v47 }
 0x635   : > { %1686 = vpow2.f32 %v1503_v48 }
 0x636   : > { %1688 = vrcp.f32 %v748_v49  ;;  %v761_v58 = vand.u32 2147483648, %v748_v49  ;;  %v759_v60 = vand.u32 2147483647, %v748_v49  ;;  %vm755_vm11 = vweird.f32 %v748_v49 }
 0x638   : > { %v762_v63 = vor.u32 1.1754944e-38, %v761_v58  ;;  %vm760_vm13 = vcmp.eq.f32.partialorder %v759_v60, 8.507059e+37 }
 0x63b   : > { %v1687_v51 = vpop.eup %1686 }
 0x63c   : > { %v1689_v52 = vpop.eup %1688  ;;  %v749_v53 = vadd.f32 1.0, %v1687_v51 }
 0x63d   : > { %v751_v55 = vmul.f32 %v1689_v52, %v748_v49  ;;  %vm756_vm10 = vweird.f32 %v1689_v52 }
 0x63e   : > { %1690 = vrcp.f32 %v749_v53  ;;  %vm757_vm12 = vmor %vm755_vm11, %vm756_vm10  ;;  %v776_v6 = vand.u32 2147483648, %v749_v53  ;;  %v774_v14 = vand.u32 2147483647, %v749_v53  ;;  %vm770_vm15 = vweird.f32 %v749_v53 }
 0x63f   : > { %v752_v57 = vsub.f32 1.0, %v751_v55 }
 0x640   : > { %v777_v17 = vor.u32 1.1754944e-38, %v776_v6  ;;  %vm775_vm2 = vcmp.eq.f32.partialorder %v774_v14, 8.507059e+37 }
 0x641   : > { %v753_v59 = vmul.f32 %v1689_v52, %v752_v57 }
 0x643   : > { %v754_v61 = vadd.f32 %v1689_v52, %v753_v59 }
 0x644   : > { %v1691_v62 = vpop.eup %1690 }
 0x645   : > { %v758_v0 = vsel %vm757_vm12, %v1689_v52, %v754_v61  ;;  %v766_v1 = vmul.f32 %v1691_v62, %v749_v53  ;;  %vm771_vm14 = vweird.f32 %v1691_v62 }
 0x646   : > { %v763_v3 = vsel %vm760_vm13, %v762_v63, %v758_v0  ;;  %vm772_vm1 = vmor %vm770_vm15, %vm771_vm14 }
 0x647   : > { %786 = vrot.lane.b32.xlu1 %v763_v3, %s1930_s29  ;;  %v767_v5 = vsub.f32 1.0, %v766_v1  ;;  %v816_v37 = vmul.f32 %v763_v3, %v2208_v35 }
 0x649   : > { %v768_v9 = vmul.f32 %v1691_v62, %v767_v5 }
 0x64b   : > { %v769_v16 = vadd.f32 %v1691_v62, %v768_v9 }
 0x64d   : > { %v773_v19 = vsel %vm772_vm1, %v1691_v62, %v769_v16 }
 0x64e   : > { %v778_v20 = vsel %vm775_vm2, %v777_v17, %v773_v19 }
 0x64f   : > { %831 = vperm.xlu1 %1640, %v2090_v7   ;;  %788 = vrot.lane.b32.xlu2 %v778_v20, %s1930_s29  ;;  %v819_v41 = vsub.f32 1.0, %v778_v20  ;;  %v817_v43 = vmul.f32 %v778_v20, %v2210_v29 }
 0x657   : > { %835 = vperm.xlu2 %1641, %v2093_v8  }
 0x65f   : > { %1642 = vset.pattern.permute.xlu2 %v1934_v50 }
 0x660   : > { %951 = vperm.xlu2 %1642, %v2090_v7  }
 0x6a9   : > { %v789_v15 = vpop.permute.xlu2 %788 }
 0x6aa   : > { %v793_v22 = vmul.f32 %v789_v15, %v2210_v29 }
 0x6b1   : > { %v836_v48 = vpop.permute.xlu2 %835 }
 0x6b2   : > { %v839_v51 = vmul.f32 %v836_v48, %v2100_v10 }
 0x6b4   : > { %v841_v53 = vadd.f32 %v839_v51, %v2103_v11 }
 0x6b9   : > { %v787_v21 = vpop.permute.xlu1 %786 }
 0x6ba   : > { %v792_v24 = vmul.f32 %v787_v21, %v2208_v35 }
 0x6bc   : > { %v794_v26 = vpack.c.bf16 %v793_v22, %v792_v24 }
 0x6be   : > { %1504 = vmatmul.msk.bf16.vlgmr.msra.gmra.mxu0 %vm307_vm0, %v794_v26 }
 0x6bf   : > { %1284 = vmatpush.bf16.msra.mxu0 %v2115_v27  ;;  %v818_v27 = vsub.f32 1.0, %v763_v3 }
 0x6c1   : > { %v832_v45 = vpop.permute.xlu1 %831 }
 0x6c2   : > { %v838_v46 = vmul.f32 %v832_v45, %v2100_v10 }
 0x6c3   : > { %1285 = vmatpush.bf16.msra.mxu0 %v2119_v33 }
 0x6c4   : > { %v840_v47 = vadd.f32 %v838_v46, %v2103_v11 }
 0x73b   : > { %v807_v30 = vpop.f32.mrf.mxu0 }
 0x73c   : > { %v812_v25 = vadd.f32 %v807_v30, %v782_v31 }
 0x73e   : > { %1692 = vtanh.f32 %v812_v25 }
 0x743   : > { %v809_v36 = vpop.f32.mrf.mxu0 }
 0x744   : > { %v813_v38 = vadd.f32 %v809_v36, %v783_v34  ;;  %v1693_v39 = vpop.eup %1692 }
 0x745   : > { %v820_v33 = vmul.f32 %v1693_v39, %v818_v27  ;;  %v900_v39 = vmul.f32 %v832_v45, %v2133_v54 }
 0x746   : > { %1694 = vtanh.f32 %v813_v38 }
 0x747   : > { %v2245_v2 = vadd.f32 %v820_v33, %v816_v37  ;;  %v901_v33 = vmul.f32 %v836_v48, %v2133_v54 }
 0x749   : > { %v903_v37 = vadd.f32 %v901_v33, %v2138_v56 }
 0x74c   : > { %v1695_v42 = vpop.eup %1694 }
 0x74d   : > { %v821_v44 = vmul.f32 %v1695_v42, %v819_v41  ;;  %v902_v41 = vadd.f32 %v900_v39, %v2138_v56 }
 0x74f   : > { %v2247_v40 = vadd.f32 %v821_v44, %v817_v43 }
 0x751   : > { %v842_v4 = vpack.c.bf16 %v2247_v40, %v2245_v2 }
 0x753   : > { %1506 = vmatmul.msk.bf16.vlgmr.msra.gmra.mxu1 %vm307_vm0, %v842_v4 }
 0x7d0   : > { %v855_v49 = vpop.f32.mrf.mxu1 }
 0x7d1   : > { %v860_v50 = vadd.f32 %v855_v49, %v840_v47 }
 0x7d3   : > { %v1507_v52 = vmul.f32 -1.442695, %v860_v50 }
 0x7d5   : > { %1696 = vpow2.f32 %v1507_v52 }
 0x7d8   : > { %v857_v55 = vpop.f32.mrf.mxu1 }
 0x7d9   : > { %v861_v57 = vadd.f32 %v857_v55, %v841_v53 }
 0x7db   : > { %v1697_v58 = vpop.eup %1696  ;;  %v1508_v59 = vmul.f32 -1.442695, %v861_v57  ;;  %v2275_v57 = vpop.permute.xlu2 %951 }
 0x7dc   : > { %v868_v60 = vadd.f32 1.0, %v1697_v58  ;;  %v958_v58 = vmul.f32 %v2275_v57, %v2100_v10 }
 0x7dd   : > { %1698 = vpow2.f32 %v1508_v59 }
 0x7de   : > { %1700 = vrcp.f32 %v868_v60  ;;  %v881_v3 = vand.u32 2147483648, %v868_v60  ;;  %v879_v6 = vand.u32 2147483647, %v868_v60  ;;  %vm875_vm4 = vweird.f32 %v868_v60 }
 0x7df   : > { %v960_v59 = vadd.f32 %v958_v58, %v2103_v11 }
 0x7e0   : > { %v882_v16 = vor.u32 1.1754944e-38, %v881_v3  ;;  %vm880_vm6 = vcmp.eq.f32.partialorder %v879_v6, 8.507059e+37 }
 0x7e3   : > { %v1699_v61 = vpop.eup %1698 }
 0x7e4   : > { %v1701_v62 = vpop.eup %1700  ;;  %v869_v63 = vadd.f32 1.0, %v1699_v61 }
 0x7e5   : > { %v871_v0 = vmul.f32 %v1701_v62, %v868_v60  ;;  %vm876_vm3 = vweird.f32 %v1701_v62 }
 0x7e6   : > { %1702 = vrcp.f32 %v869_v63  ;;  %vm877_vm5 = vmor %vm875_vm4, %vm876_vm3  ;;  %v896_v21 = vand.u32 2147483648, %v869_v63  ;;  %v894_v24 = vand.u32 2147483647, %v869_v63  ;;  %vm890_vm8 = vweird.f32 %v869_v63 }
 0x7e7   : > { %v872_v1 = vsub.f32 1.0, %v871_v0 }
 0x7e8   : > { %v897_v28 = vor.u32 1.1754944e-38, %v896_v21  ;;  %vm895_vm10 = vcmp.eq.f32.partialorder %v894_v24, 8.507059e+37 }
 0x7e9   : > { %v873_v5 = vmul.f32 %v1701_v62, %v872_v1 }
 0x7eb   : > { %v874_v9 = vadd.f32 %v1701_v62, %v873_v5 }
 0x7ec   : > { %v1703_v14 = vpop.eup %1702 }
 0x7ed   : > { %v878_v17 = vsel %vm877_vm5, %v1701_v62, %v874_v9  ;;  %v886_v19 = vmul.f32 %v1703_v14, %v869_v63  ;;  %vm891_vm7 = vweird.f32 %v1703_v14  ;;  %v1935_v62 = vmov 6  }
 0x7ee   : > { %v883_v20 = vsel %vm880_vm6, %v882_v16, %v878_v17  ;;  %vm892_vm9 = vmor %vm890_vm8, %vm891_vm7  ;;  %1644 = vset.pattern.permute.xlu1 %v1935_v62  ;;  %1645 = vset.pattern.permute.xlu2 %v1935_v62  ;;  %v1936_v17 = vmov 7  }
 0x7ef   : > { %906 = vrot.lane.b32.xlu0 %v883_v20, %s1930_s29  ;;  %v887_v15 = vsub.f32 1.0, %v886_v19  ;;  %v938_v46 = vsub.f32 1.0, %v883_v20  ;;  %v936_v51 = vmul.f32 %v883_v20, %v2245_v2 }
 0x7f1   : > { %v888_v22 = vmul.f32 %v1703_v14, %v887_v15 }
 0x7f3   : > { %v889_v26 = vadd.f32 %v1703_v14, %v888_v22 }
 0x7f5   : > { %v893_v30 = vsel %vm892_vm9, %v1703_v14, %v889_v26 }
 0x7f6   : > { %v898_v31 = vsel %vm895_vm10, %v897_v28, %v893_v30 }
 0x7f7   : > { %955 = vperm.xlu0 %1643, %v2093_v8   ;;  %908 = vrot.lane.b32.xlu1 %v898_v31, %s1930_s29  ;;  %v939_v47 = vsub.f32 1.0, %v898_v31  ;;  %v937_v45 = vmul.f32 %v898_v31, %v2247_v40 }
 0x7ff   : > { %1647 = vset.pattern.permute.xlu0 %v1936_v17 }
 0x861   : > { %v907_v32 = vpop.permute.xlu0 %906 }
 0x862   : > { %v912_v34 = vmul.f32 %v907_v32, %v2245_v2 }
 0x869   : > { %v909_v25 = vpop.permute.xlu1 %908  ;;  %v2280_v60 = vpop.permute.xlu0 %955 }
 0x86a   : > { %v913_v36 = vmul.f32 %v909_v25, %v2247_v40  ;;  %v959_v0 = vmul.f32 %v2280_v60, %v2100_v10 }
 0x86c   : > { %v914_v38 = vpack.c.bf16 %v913_v36, %v912_v34  ;;  %v961_v3 = vadd.f32 %v959_v0, %v2103_v11 }
 0x86e   : > { %1509 = vmatmul.msk.bf16.vlgmr.msra.gmra.mxu2 %vm307_vm0, %v914_v38 }
 0x8f1   : > { %v927_v27 = vpop.f32.mrf.mxu2 }
 0x8f2   : > { %v932_v42 = vadd.f32 %v927_v27, %v902_v41 }
 0x8f4   : > { %1704 = vtanh.f32 %v932_v42 }
 0x8f9   : > { %v929_v43 = vpop.f32.mrf.mxu2 }
 0x8fa   : > { %v933_v44 = vadd.f32 %v929_v43, %v903_v37  ;;  %v1705_v4 = vpop.eup %1704 }
 0x8fb   : > { %v940_v49 = vmul.f32 %v1705_v4, %v938_v46 }
 0x8fc   : > { %1706 = vtanh.f32 %v933_v44 }
 0x8fd   : > { %v2268_v53 = vadd.f32 %v940_v49, %v936_v51 }
 0x902   : > { %v1707_v50 = vpop.eup %1706 }
 0x903   : > { %v941_v52 = vmul.f32 %v1707_v50, %v939_v47  ;;  %v1020_v50 = vmul.f32 %v2275_v57, %v2133_v54 }
 0x905   : > { %v2270_v48 = vadd.f32 %v941_v52, %v937_v45  ;;  %v1022_v45 = vadd.f32 %v1020_v50, %v2138_v56  ;;  %v1021_v52 = vmul.f32 %v2280_v60, %v2133_v54 }
 0x907   : > { %v962_v55 = vpack.c.bf16 %v2270_v48, %v2268_v53 }
 0x909   : > { %1511 = vmatmul.msk.bf16.vlgmr.msra.gmra.mxu3 %vm307_vm0, %v962_v55 }
 0x98c   : > { %v975_v61 = vpop.f32.mrf.mxu3 }
 0x98d   : > { %v980_v63 = vadd.f32 %v975_v61, %v960_v59 }
 0x98f   : > { %v1512_v1 = vmul.f32 -1.442695, %v980_v63 }
 0x991   : > { %1708 = vpow2.f32 %v1512_v1 }
 0x994   : > { %v977_v5 = vpop.f32.mrf.mxu3 }
 0x995   : > { %v981_v6 = vadd.f32 %v977_v5, %v961_v3 }
 0x997   : > { %v1709_v9 = vpop.eup %1708  ;;  %v1513_v14 = vmul.f32 -1.442695, %v981_v6 }
 0x998   : > { %v988_v16 = vadd.f32 1.0, %v1709_v9 }
 0x999   : > { %1710 = vpow2.f32 %v1513_v14 }
 0x99a   : > { %1712 = vrcp.f32 %v988_v16  ;;  %v1001_v24 = vand.u32 2147483648, %v988_v16  ;;  %v999_v28 = vand.u32 2147483647, %v988_v16  ;;  %vm995_vm12 = vweird.f32 %v988_v16 }
 0x99c   : > { %v1002_v32 = vor.u32 1.1754944e-38, %v1001_v24  ;;  %vm1000_vm14 = vcmp.eq.f32.partialorder %v999_v28, 8.507059e+37 }
 0x99f   : > { %v1711_v19 = vpop.eup %1710 }
 0x9a0   : > { %v1713_v20 = vpop.eup %1712  ;;  %v989_v15 = vadd.f32 1.0, %v1711_v19 }
 0x9a1   : > { %v991_v21 = vmul.f32 %v1713_v20, %v988_v16  ;;  %vm996_vm11 = vweird.f32 %v1713_v20 }
 0x9a2   : > { %1714 = vrcp.f32 %v989_v15  ;;  %vm997_vm13 = vmor %vm995_vm12, %vm996_vm11  ;;  %v1016_v39 = vand.u32 2147483648, %v989_v15  ;;  %v1014_v41 = vand.u32 2147483647, %v989_v15  ;;  %vm1010_vm1 = vweird.f32 %v989_v15 }
 0x9a3   : > { %v992_v22 = vsub.f32 1.0, %v991_v21 }
 0x9a4   : > { %v1017_v42 = vor.u32 1.1754944e-38, %v1016_v39  ;;  %vm1015_vm3 = vcmp.eq.f32.partialorder %v1014_v41, 8.507059e+37 }
 0x9a5   : > { %v993_v26 = vmul.f32 %v1713_v20, %v992_v22 }
 0x9a7   : > { %v994_v30 = vadd.f32 %v1713_v20, %v993_v26 }
 0x9a8   : > { %v1715_v31 = vpop.eup %1714 }
 0x9a9   : > { %v998_v25 = vsel %vm997_vm13, %v1713_v20, %v994_v30  ;;  %v1006_v34 = vmul.f32 %v1715_v31, %v989_v15  ;;  %vm1011_vm15 = vweird.f32 %v1715_v31 }
 0x9aa   : > { %v1003_v36 = vsel %vm1000_vm14, %v1002_v32, %v998_v25  ;;  %vm1012_vm2 = vmor %vm1010_vm1, %vm1011_vm15 }
 0x9ab   : > { %1026 = vrot.lane.b32.xlu1 %v1003_v36, %s1930_s29  ;;  %v1007_v38 = vsub.f32 1.0, %v1006_v34  ;;  %v1058_v62 = vsub.f32 1.0, %v1003_v36  ;;  %v1056_v57 = vmul.f32 %v1003_v36, %v2268_v53 }
 0x9ad   : > { %v1008_v27 = vmul.f32 %v1715_v31, %v1007_v38 }
 0x9af   : > { %v1009_v33 = vadd.f32 %v1715_v31, %v1008_v27 }
 0x9b1   : > { %v1013_v37 = vsel %vm1012_vm2, %v1715_v31, %v1009_v33 }
 0x9b2   : > { %v1018_v43 = vsel %vm1015_vm3, %v1017_v42, %v1013_v37 }
 0x9b3   : > { %1071 = vperm.xlu1 %1644, %v2090_v7   ;;  %1028 = vrot.lane.b32.xlu2 %v1018_v43, %s1930_s29  ;;  %v1059_v63 = vsub.f32 1.0, %v1018_v43  ;;  %v1057_v3 = vmul.f32 %v1018_v43, %v2270_v48 }
 0x9bb   : > { %1075 = vperm.xlu2 %1645, %v2093_v8  }
 0x9c3   : > { %1646 = vset.pattern.permute.xlu2 %v1936_v17 }
 0x9c4   : > { %1191 = vperm.xlu2 %1646, %v2090_v7   ;;  %v1023_v7 = vadd.f32 %v1021_v52, %v2138_v56 }
 0xa0d   : > { %v1029_v44 = vpop.permute.xlu2 %1028 }
 0xa0e   : > { %v1033_v46 = vmul.f32 %v1029_v44, %v2270_v48 }
 0xa15   : > { %v1076_v19 = vpop.permute.xlu2 %1075 }
 0xa16   : > { %v1079_v21 = vmul.f32 %v1076_v19, %v2100_v10 }
 0xa18   : > { %v1081_v24 = vadd.f32 %v1079_v21, %v2103_v11 }
 0xa1d   : > { %v1027_v4 = vpop.permute.xlu1 %1026 }
 0xa1e   : > { %v1032_v47 = vmul.f32 %v1027_v4, %v2268_v53 }
 0xa20   : > { %v1034_v49 = vpack.c.bf16 %v1033_v46, %v1032_v47 }
 0xa22   : > { %1514 = vmatmul.msk.bf16.vlgmr.msrb.gmra.mxu0 %vm307_vm0, %v1034_v49 }
 0xa25   : > { %v1072_v14 = vpop.permute.xlu1 %1071 }
 0xa26   : > { %v1078_v16 = vmul.f32 %v1072_v14, %v2100_v10 }
 0xa28   : > { %v1080_v17 = vadd.f32 %v1078_v16, %v2103_v11 }
 0xa9f   : > { %v1047_v51 = vpop.f32.mrf.mxu0 }
 0xaa0   : > { %v1052_v55 = vadd.f32 %v1047_v51, %v1022_v45 }
 0xaa2   : > { %1716 = vtanh.f32 %v1052_v55 }
 0xaa7   : > { %v1049_v58 = vpop.f32.mrf.mxu0 }
 0xaa8   : > { %v1053_v59 = vadd.f32 %v1049_v58, %v1023_v7  ;;  %v1717_v61 = vpop.eup %1716 }
 0xaa9   : > { %v1060_v0 = vmul.f32 %v1717_v61, %v1058_v62 }
 0xaaa   : > { %1718 = vtanh.f32 %v1053_v59 }
 0xaab   : > { %v2301_v6 = vadd.f32 %v1060_v0, %v1056_v57  ;;  %v1140_v0 = vmul.f32 %v1072_v14, %v2133_v54 }
 0xaad   : > { %v1142_v57 = vadd.f32 %v1140_v0, %v2138_v56 }
 0xab0   : > { %v1719_v1 = vpop.eup %1718 }
 0xab1   : > { %v1061_v5 = vmul.f32 %v1719_v1, %v1059_v63 }
 0xab3   : > { %v2303_v60 = vadd.f32 %v1061_v5, %v1057_v3  ;;  %v1141_v3 = vmul.f32 %v1076_v19, %v2133_v54 }
 0xab5   : > { %v1082_v9 = vpack.c.bf16 %v2303_v60, %v2301_v6 }
 0xab7   : > { %1516 = vmatmul.msk.bf16.vlgmr.msrb.gmra.mxu1 %vm307_vm0, %v1082_v9 }
 0xb34   : > { %v1095_v20 = vpop.f32.mrf.mxu1 }
 0xb35   : > { %v1100_v15 = vadd.f32 %v1095_v20, %v1080_v17 }
 0xb37   : > { %v1517_v22 = vmul.f32 -1.442695, %v1100_v15 }
 0xb39   : > { %1720 = vpow2.f32 %v1517_v22 }
 0xb3c   : > { %v1097_v26 = vpop.f32.mrf.mxu1 }
 0xb3d   : > { %v1101_v28 = vadd.f32 %v1097_v26, %v1081_v24 }
 0xb3f   : > { %v1721_v30 = vpop.eup %1720  ;;  %v1518_v31 = vmul.f32 -1.442695, %v1101_v28 }
 0xb40   : > { %v1108_v32 = vadd.f32 1.0, %v1721_v30 }
 0xb41   : > { %1722 = vpow2.f32 %v1518_v31  ;;  %v1192_v31 = vpop.permute.xlu2 %1191 }
 0xb42   : > { %1724 = vrcp.f32 %v1108_v32  ;;  %v1121_v27 = vand.u32 2147483648, %v1108_v32  ;;  %v1119_v33 = vand.u32 2147483647, %v1108_v32  ;;  %vm1115_vm5 = vweird.f32 %v1108_v32 }
 0xb44   : > { %v1122_v43 = vor.u32 1.1754944e-38, %v1121_v27  ;;  %vm1120_vm7 = vcmp.eq.f32.partialorder %v1119_v33, 8.507059e+37 }
 0xb47   : > { %v1723_v25 = vpop.eup %1722 }
 0xb48   : > { %v1725_v34 = vpop.eup %1724  ;;  %v1109_v36 = vadd.f32 1.0, %v1723_v25 }
 0xb49   : > { %v1111_v38 = vmul.f32 %v1725_v34, %v1108_v32  ;;  %vm1116_vm4 = vweird.f32 %v1725_v34  ;;  %v1198_v32 = vmul.f32 %v1192_v31, %v2100_v10 }
 0xb4a   : > { %1726 = vrcp.f32 %v1109_v36  ;;  %vm1117_vm6 = vmor %vm1115_vm5, %vm1116_vm4  ;;  %v1136_v49 = vand.u32 2147483648, %v1109_v36  ;;  %v1134_v51 = vand.u32 2147483647, %v1109_v36  ;;  %vm1130_vm9 = vweird.f32 %v1109_v36 }
 0xb4b   : > { %v1112_v39 = vsub.f32 1.0, %v1111_v38  ;;  %v1200_v25 = vadd.f32 %v1198_v32, %v2103_v11 }
 0xb4c   : > { %v1137_v52 = vor.u32 1.1754944e-38, %v1136_v49  ;;  %vm1135_vm11 = vcmp.eq.f32.partialorder %v1134_v51, 8.507059e+37 }
 0xb4d   : > { %v1113_v41 = vmul.f32 %v1725_v34, %v1112_v39 }
 0xb4f   : > { %v1114_v42 = vadd.f32 %v1725_v34, %v1113_v41 }
 0xb50   : > { %v1727_v37 = vpop.eup %1726 }
 0xb51   : > { %v1118_v44 = vsel %vm1117_vm6, %v1725_v34, %v1114_v42  ;;  %v1126_v4 = vmul.f32 %v1727_v37, %v1109_v36  ;;  %vm1131_vm8 = vweird.f32 %v1727_v37 }
 0xb52   : > { %v1123_v46 = vsel %vm1120_vm7, %v1122_v43, %v1118_v44  ;;  %vm1132_vm10 = vmor %vm1130_vm9, %vm1131_vm8 }
 0xb53   : > { %1146 = vrot.lane.b32.xlu0 %v1123_v46, %s1930_s29  ;;  %v1127_v47 = vsub.f32 1.0, %v1126_v4  ;;  %v1178_v20 = vsub.f32 1.0, %v1123_v46  ;;  %v1176_v24 = vmul.f32 %v1123_v46, %v2301_v6 }
 0xb55   : > { %v1128_v50 = vmul.f32 %v1727_v37, %v1127_v47 }
 0xb57   : > { %v1129_v45 = vadd.f32 %v1727_v37, %v1128_v50 }
 0xb59   : > { %v1133_v55 = vsel %vm1132_vm10, %v1727_v37, %v1129_v45 }
 0xb5a   : > { %v1138_v7 = vsel %vm1135_vm11, %v1137_v52, %v1133_v55 }
 0xb5b   : > { %1195 = vperm.xlu0 %1647, %v2093_v8   ;;  %1148 = vrot.lane.b32.xlu1 %v1138_v7, %s1930_s29  ;;  %v1143_v8 = vadd.f32 %v1141_v3, %v2138_v56  ;;  %v1179_v15 = vsub.f32 1.0, %v1138_v7  ;;  %v1177_v14 = vmul.f32 %v1138_v7, %v2303_v60 }
 0xbc5   : > { %v1147_v58 = vpop.permute.xlu0 %1146 }
 0xbc6   : > { %v1152_v61 = vmul.f32 %v1147_v58, %v2301_v6 }
 0xbcd   : > { %v1149_v59 = vpop.permute.xlu1 %1148  ;;  %v2333_v34 = vpop.permute.xlu0 %1195 }
 0xbce   : > { %v1153_v62 = vmul.f32 %v1149_v59, %v2303_v60  ;;  %v1199_v39 = vmul.f32 %v2333_v34, %v2100_v10  ;;  %v1261_v32 = vmul.f32 %v2333_v34, %v2133_v54 }
 0xbd0   : > { %v1154_v63 = vpack.c.bf16 %v1153_v62, %v1152_v61  ;;  %v1201_v41 = vadd.f32 %v1199_v39, %v2103_v11  ;;  %v825_v39 = vstv %s2350_s14 }
 0xbd2   : > { %1519 = vmatmul.msk.bf16.vlgmr.msrb.gmra.mxu2 %vm307_vm0, %v1154_v63 }
 0xc55   : > { %v1167_v1 = vpop.f32.mrf.mxu2 }
 0xc56   : > { %v1172_v5 = vadd.f32 %v1167_v1, %v1142_v57 }
 0xc58   : > { %1728 = vtanh.f32 %v1172_v5 }
 0xc5d   : > { %v1169_v9 = vpop.f32.mrf.mxu2 }
 0xc5e   : > { %v1173_v16 = vadd.f32 %v1169_v9, %v1143_v8  ;;  %v1729_v17 = vpop.eup %1728 }
 0xc5f   : > { %v1180_v21 = vmul.f32 %v1729_v17, %v1178_v20 }
 0xc60   : > { %1730 = vtanh.f32 %v1173_v16 }
 0xc61   : > { %v2324_v28 = vadd.f32 %v1180_v21, %v1176_v24  ;;  %v1545_v21 = vld [vmem:[#allocation9] sm:$0xff] }
 0xc66   : > { %v1731_v22 = vpop.eup %1730 }
 0xc67   : > { %v1181_v26 = vmul.f32 %v1731_v22, %v1179_v15  ;;  %v1546_v15 = vld [vmem:[#allocation9 + $0x8] sm:$0xff]  ;;  %v1260_v22 = vmul.f32 %v1192_v31, %v2133_v54  ;;  %v465_v31 = vstv %s464_s8  ;;  %s1346_s8 = scalar_lea.sflag [#allocation6], %s273_s18 }
 0xc68   : > { %1335 = vmatpush.bf16.msra.mxu1 %v1546_v15  ;;  %v467_v54 = vmul.f32 %v465_v31, %v2146_v13 }
 0xc69   : > { %v2326_v19 = vadd.f32 %v1181_v26, %v1177_v14  ;;  %v1262_v24 = vadd.f32 %v1260_v22, %v2138_v56 }
 0xc6b   : > { %v1202_v30 = vpack.c.bf16 %v2326_v19, %v2324_v28 }
 0xc6c   : > { %1336 = vmatpush.bf16.msra.mxu1 %v1545_v21 }
 0xc6d   : > { %1521 = vmatmul.msk.bf16.vlgmr.msrb.gmra.mxu3 %vm307_vm0, %v1202_v30  ;;  %v585_v30 = vstv %s1495_s7  ;;  %s1360_s7 = sshll.u32 %s1357_s24, 4  ;;  %s1361_s7 = int_to_ptr.hbm [resolvable:$true] %s1360_s7 }
 0xcf0   : > { %v1215_v36 = vpop.f32.mrf.mxu3 }
 0xcf1   : > { %v1220_v38 = vadd.f32 %v1215_v36, %v1200_v25  ;;  %v705_v25 = vstv %s1500_s13  ;;  %v586_v36 = vmul.f32 %v585_v30, %v2181_v23  ;;  %s1861_s13 = sshra.s32 %s1361_s7, 4  ;;  %s1862_s13 = int_to_ptr.hbm [resolvable:$true] %s1861_s13 }
 0xcf2   : > { %v707_v34 = vmul.f32 %v705_v25, %v2210_v29  ;;  %s1863_s14 = scalar_lea.hbm %s1862_s13, 16  ;;  %p1868_p3 = scmp.lt.s32.totalorder %s1862_s13, %s2428_s6 }
 0xcf3   : > { %v1522_v27 = vmul.f32 -1.442695, %v1220_v38  ;;  %v587_v38 = vmul.f32 %v585_v30, %v2183_v18  ;;  %p1864_p0 = scmp.ne.s32.totalorder %s1862_s13, %s1863_s14 }
 0xcf5   : > { %1732 = vpow2.f32 %v1522_v27  ;;  %v466_v27 = vmul.f32 %v465_v31, %v2144_v12  ;;  %p1865_p1 = pnand %p1864_p0, %p2015_p5 }
 0xcf7   : > { %v588_v18 = vadd.f32 %v586_v36, %v466_v27  ;;  %p1866_p2 = pneg %p1865_p1 }
 0xcf8   : > { %v1217_v33 = vpop.f32.mrf.mxu3 }
 0xcf9   : > { %v1221_v42 = vadd.f32 %v1217_v33, %v1201_v41  ;;  %v706_v41 = vmul.f32 %v705_v25, %v2208_v35  ;;  %v1263_v33 = vadd.f32 %v1261_v32, %v2138_v56  ;;  %v1065_v35 = vstv %s2355_s15  ;;  %s1867_s15 = scalar_lea.hbm %s2428_s6, 32 }
 0xcfa   : > { %v827_v56 = vmul.f32 %v825_v39, %v2247_v40  ;;  %p1869_p4 = scmp.lt.s32.totalorder %s1867_s15, %s1863_s14 }
 0xcfb   : > { %v1733_v37 = vpop.eup %1732  ;;  %v1523_v43 = vmul.f32 -1.442695, %v1221_v42  ;;  %v945_v42 = vstv %s2353_s16 }
 0xcfc   : > { %v1228_v44 = vadd.f32 1.0, %v1733_v37  ;;  %v946_v13 = vmul.f32 %v945_v42, %v2268_v53  ;;  %p1870_p7 = por %p1869_p4, %p1868_p3 }
 0xcfd   : > { %1734 = vpow2.f32 %v1523_v43 }
 0xcfe   : > { %1736 = vrcp.f32 %v1228_v44  ;;  %v1241_v51 = vand.u32 2147483648, %v1228_v44  ;;  %v1239_v10 = vand.u32 2147483647, %v1228_v44  ;;  %vm1235_vm13 = vweird.f32 %v1228_v44  ;;  %p1871_p8 = pnand %p1870_p7, %p1866_p2 }
 0xd00   : > { %v1242_v55 = vor.u32 1.1754944e-38, %v1241_v51  ;;  %vm1240_vm15 = vcmp.eq.f32.partialorder %v1239_v10, 8.507059e+37  ;;  %v947_v51 = vmul.f32 %v945_v42, %v2270_v48 }
 0xd03   : > { %v1735_v4 = vpop.eup %1734 }
 0xd04   : > { %v1737_v46 = vpop.eup %1736  ;;  %v1229_v47 = vadd.f32 1.0, %v1735_v4  ;;  %v589_v4 = vadd.f32 %v587_v38, %v467_v54 }
 0xd05   : > { %v1231_v49 = vmul.f32 %v1737_v46, %v1228_v44  ;;  %vm1236_vm12 = vweird.f32 %v1737_v46  ;;  %v826_v44 = vmul.f32 %v825_v39, %v2245_v2  ;;  %v1066_v2 = vmul.f32 %v1065_v35, %v2301_v6 }
 0xd06   : > { %1738 = vrcp.f32 %v1229_v47  ;;  %vm1237_vm14 = vmor %vm1235_vm13, %vm1236_vm12  ;;  %v1256_v62 = vand.u32 2147483648, %v1229_v47  ;;  %v1254_v0 = vand.u32 2147483647, %v1229_v47  ;;  %vm1250_vm2 = vweird.f32 %v1229_v47 }
 0xd07   : > { %v1232_v50 = vsub.f32 1.0, %v1231_v49  ;;  %v709_v29 = vadd.f32 %v707_v34, %v589_v4 }
 0xd08   : > { %v1257_v57 = vor.u32 1.1754944e-38, %v1256_v62  ;;  %vm1255_vm4 = vcmp.eq.f32.partialorder %v1254_v0, 8.507059e+37 }
 0xd09   : > { %v1233_v45 = vmul.f32 %v1737_v46, %v1232_v50 }
 0xd0b   : > { %v1234_v52 = vadd.f32 %v1737_v46, %v1233_v45  ;;  %v1185_v45 = vstv %s2360_s12 }
 0xd0c   : > { %v1739_v11 = vpop.eup %1738  ;;  %v1186_v53 = vmul.f32 %v1185_v45, %v2324_v28  ;;  %v1187_v6 = vmul.f32 %v1185_v45, %v2326_v19 }
 0xd0d   : > { %v1238_v7 = vsel %vm1237_vm14, %v1737_v46, %v1234_v52  ;;  %v1246_v58 = vmul.f32 %v1739_v11, %v1229_v47  ;;  %vm1251_vm1 = vweird.f32 %v1739_v11  ;;  %v708_v47 = vadd.f32 %v706_v41, %v588_v18 }
 0xd0e   : > { %v2338_v59 = vsel %vm1240_vm15, %v1242_v55, %v1238_v7  ;;  %vm1252_vm3 = vmor %vm1250_vm2, %vm1251_vm1  ;;  %v829_v52 = vadd.f32 %v827_v56, %v709_v29  ;;  %v1305_v55 = vstv %s2366_s17  ;;  %v1067_v7 = vmul.f32 %v1065_v35, %v2303_v60 }
 0xd0f   : > { %1266 = vrot.lane.b32.xlu1 %v2338_v59, %s1930_s29  ;;  %v1247_v61 = vsub.f32 1.0, %v1246_v58  ;;  %v1298_v23 = vsub.f32 1.0, %v2338_v59  ;;  %v1296_v49 = vmul.f32 %v2338_v59, %v2324_v28  ;;  %v828_v50 = vadd.f32 %v826_v44, %v708_v47 }
 0xd10   : > { %v949_v62 = vadd.f32 %v947_v51, %v829_v52 }
 0xd11   : > { %v1248_v63 = vmul.f32 %v1739_v11, %v1247_v61 }
 0xd13   : > { %v1249_v1 = vadd.f32 %v1739_v11, %v1248_v63 }
 0xd15   : > { %v1253_v3 = vsel %vm1252_vm3, %v1739_v11, %v1249_v1  ;;  %v948_v11 = vadd.f32 %v946_v13, %v828_v50  ;;  %v1069_v1 = vadd.f32 %v1067_v7, %v949_v62 }
 0xd16   : > { %v2342_v5 = vsel %vm1255_vm4, %v1257_v57, %v1253_v3 }
 0xd17   : > { %1268 = vrot.lane.b32.xlu2 %v2342_v5, %s1930_s29  ;;  %v1299_v40 = vsub.f32 1.0, %v2342_v5  ;;  %v1068_v61 = vadd.f32 %v1066_v2, %v948_v11  ;;  %v1297_v48 = vmul.f32 %v2342_v5, %v2326_v19  ;;  %v1189_v3 = vadd.f32 %v1187_v6, %v1069_v1  ;;  %v1744_v5 = vld [vmem:[#allocation4] sm:$0x1f]  ;;  %s1358_s29 = sshll.u32 %s275_s21, 4  ;;  %s1359_s29 = int_to_ptr.vmem [resolvable:$true] %s1358_s29 }
 0xd19   : > { %v1188_v0 = vadd.f32 %v1186_v53, %v1068_v61 }
 0xd71   : > { %v1269_v8 = vpop.permute.xlu2 %1268 }
 0xd72   : > { %v1273_v16 = vmul.f32 %v1269_v8, %v2326_v19 }
 0xd81   : > { %v1267_v9 = vpop.permute.xlu1 %1266 }
 0xd82   : > { %v1272_v17 = vmul.f32 %v1267_v9, %v2324_v28 }
 0xd84   : > { %v1274_v20 = vpack.c.bf16 %v1273_v16, %v1272_v17 }
 0xd86   : > { %1524 = vmatmul.msk.bf16.vlgmr.msra.gmra.mxu0 %vm307_vm0, %v1274_v20  ;;  %v1313_v20 = vperm.slane %v1744_v5, 4 }
 0xe03   : > { %v1287_v14 = vpop.f32.mrf.mxu0 }
 0xe04   : > { %v1292_v26 = vadd.f32 %v1287_v14, %v1262_v24 }
 0xe06   : > { %1740 = vtanh.f32 %v1292_v26 }
 0xe0b   : > { %v1289_v37 = vpop.f32.mrf.mxu0 }
 0xe0c   : > { %v1741_v43 = vpop.eup %1740  ;;  %v1293_v12 = vadd.f32 %v1289_v37, %v1263_v33 }
 0xe0d   : > { %v1300_v46 = vmul.f32 %v1741_v43, %v1298_v23 }
 0xe0e   : > { %1742 = vtanh.f32 %v1293_v12 }
 0xe0f   : > { %v1302_v10 = vadd.f32 %v1300_v46, %v1296_v49 }
 0xe11   : > { %v1306_v59 = vmul.f32 %v1305_v55, %v1302_v10 }
 0xe13   : > { %v1308_v60 = vadd.f32 %v1306_v59, %v1188_v0 }
 0xe14   : > { %v1743_v58 = vpop.eup %1742 }
 0xe15   : > { %v1301_v63 = vmul.f32 %v1743_v58, %v1299_v40  ;;  %v1310_v28 = vmax.f32 %v1308_v60, 0.0 }
 0xe17   : > { %v1303_v57 = vadd.f32 %v1301_v63, %v1297_v48 }
 0xe19   : > { %v1307_v8 = vmul.f32 %v1305_v55, %v1303_v57 }
 0xe1b   : > { %v1309_v9 = vadd.f32 %v1307_v8, %v1189_v3 }
 0xe1d   : > { %v1311_v16 = vmax.f32 %v1309_v9, 0.0 }
 0xe1f   : > { %v1312_v17 = vpack.c.bf16 %v1311_v16, %v1310_v28 }
 0xe21   : > { %1534 = vmatmul.msk.bf16.vlgmr.msra.gmra.mxu1 %vm307_vm0, %v1312_v17 }
 0xe9e   : > { %v1338_v15 = vpop.f32.mrf.mxu1 }
 0xe9f   : > { %v1339_v19 = vadd.f32 %v1338_v15, %v1313_v20 }
 0xea1   : > { %1343 = vst [vmem:[%s275_s21] sm:$0xff] %v1339_v19 }
 0xea6   : > { %v1340_v21 = vpop.f32.mrf.mxu1 }
 0xea7   : > { %v1341_v22 = vadd.f32 %v1340_v21, %v1313_v20 }
 0xea9   : > { %1344 = vst [vmem:[%s275_s21 + $0x8] sm:$0xff] %v1341_v22 }
 0xeaa   : > { %1874 = shalt.err (!%p1871_p8)
}
 0xeab   : > { %s1937_s18 = smov 128   ;;  %s1938_s19 = smov 8  }
 0xeac   : > { %1560 = dma.vmem_to_hbm [thread:$0]  (%p2015_p5), %s1359_s29, 256, %s1361_s7, %s1346_s8, %s1937_s18, %s1937_s18, %s1938_s19  }
 0xead PF: > { %p1582_p9 = scmp.ge.s32.totalorder %s1919_s28, 2  ;;  %s1375_s20 = sand.u32 1, %s1907_s25  }
 0xeae   : > { %s1376_s21 = scalar_lea.sflag [#allocation6], %s1375_s20 }
 0xeaf   : > { %p1573_p10 = pnand %p1582_p9, %p2019_p6 }
 0xeb1   : > { %p1574_p11 = pneg %p1573_p10 }
 0xeb3   : > { %1902 = dma.done.wait (%p1574_p11), %s1376_s21, 256  }
 0xeb4   : > { %1904 = vsyncadd (%p1574_p11), %s1376_s21, 4294967040  ;;  %p26_p12 = scmp.ge.s32.totalorder %s2002_s30, 4   ;;  %s2433_s25 = smov %s1911_s26 }
 0xeb5   : > { %s2434_s26 = smov %s1915_s27  ;;  %s2435_s27 = smov %s2013_s9 }
 0xeb6   : > { %s2436_s28 = smov %s2002_s30  ;;  %28 = sbr.rel (!%p26_p12) target bundleno = 11 (0xb), region = 88 }
 0xebb   :  { %1382 = vsyncpa [#allocation5], 1 }
 0xebc   :  { %1384 = vsyncpa [#allocation5 + $0x1], 1 }
 0xebd   :  { %1385 = vsyncpa [#allocation8], 1 }
 0xebe   :  { %1386 = vsyncpa [#allocation6], 1 }
 0xebf   :  { %1388 = vsyncpa [#allocation6 + $0x1], 1 }

</bundles_post_ra>
